<compile_context>
chip_gen: v7x
topology: tpu7x:2x2x1
jax: 0.10.0
libtpu: 0.0.40
codegen_flags: <defaults>
</compile_context>

<pallas_src>
import functools

import jax
import jax.numpy as jnp
from jax.experimental import pallas as pl
from jax.experimental.pallas import tpu as pltpu

_EPS = 1e-12
_VMEM_LIMIT = 32 * 1024 * 1024  # explicit scoped-VMEM cap (safe on v5e/v6e/v7x)


# ----------------------------------------------------------------------------
# In-kernel helpers (operate on loaded f32 values)
# ----------------------------------------------------------------------------
def _ln(x, gamma, beta, eps=_EPS):
    mu = jnp.mean(x, axis=-1, keepdims=True)
    var = jnp.mean(jnp.square(x - mu), axis=-1, keepdims=True)
    return (x - mu) * jax.lax.rsqrt(var + eps) * gamma + beta


# ----------------------------------------------------------------------------
# Fused encoder-layer kernel (one grid step == one sample)
# ----------------------------------------------------------------------------
def _encoder_layer_kernel(x_ref, kbias_ref, ln_in_ref, wqkv_ref, bqkv_ref,
                          wo_ref, bo_ref, ln1_ref, w1_ref, b1_ref,
                          w2_ref, b2_ref, ln2_ref, o_ref,
                          *, num_heads, apply_input_ln):
    """One full BERT encoder layer for a single sample.

    x_ref     : (1, S, H)  bf16 activations (grid axis 0 = batch)
    kbias_ref : (1, 1, S)  f32 additive key-padding bias ((1-mask) * -1e9)
    ln_in_ref : (2, H)     f32 embedding-LN params (applied only on layer 0)
    wqkv_ref  : (H, 3H)    bf16 (q block already pre-scaled by 1/sqrt(d))
    bqkv_ref  : (1, 3H)    f32
    wo_ref    : (H, H)     bf16
    w1_ref    : (H, I) bf16, w2_ref: (I, H) bf16
    """
    x = x_ref[0].astype(jnp.float32)                      # (S, H)
    if apply_input_ln:                                    # embedding LayerNorm fused in
        x = _ln(x, ln_in_ref[0:1, :], ln_in_ref[1:2, :])

    S, H = x.shape
    nh = num_heads
    d = H // nh
    x_bf = x.astype(jnp.bfloat16)

    # --- fused QKV projection: one full-width matmul ------------------------
    qkv = jnp.dot(x_bf, wqkv_ref[...],
                  preferred_element_type=jnp.float32) + bqkv_ref[...]   # (S, 3H)

    # split into heads: (S, H) -> (nh, S, d)
    q = jnp.transpose(qkv[:, 0:H].reshape(S, nh, d), (1, 0, 2))
    k = jnp.transpose(qkv[:, H:2 * H].reshape(S, nh, d), (1, 0, 2))
    v = jnp.transpose(qkv[:, 2 * H:3 * H].reshape(S, nh, d), (1, 0, 2))

    # --- batched per-head attention (scale already baked into Wq) -----------
    s = jnp.einsum('hqd,hkd->hqk', q, k,
                   preferred_element_type=jnp.float32)                  # (nh, S, S)
    s = s + kbias_ref[...]                                              # (1,1,S) bias
    s = s - jnp.max(s, axis=-1, keepdims=True)
    p = jnp.exp(s)
    p = p * pl.reciprocal(jnp.sum(p, axis=-1, keepdims=True), approx=True)

    ctx = jnp.einsum('hqk,hkd->hqd', p.astype(jnp.bfloat16),
                     v.astype(jnp.bfloat16),
                     preferred_element_type=jnp.float32)                # (nh, S, d)
    ctx = jnp.transpose(ctx, (1, 0, 2)).reshape(S, H)                   # concat heads

    # --- single output projection + residual + LN ---------------------------
    attn = jnp.dot(ctx.astype(jnp.bfloat16), wo_ref[...],
                   preferred_element_type=jnp.float32) + bo_ref[...]
    x1 = _ln(x + attn, ln1_ref[0:1, :], ln1_ref[1:2, :])

    # --- FFN (GELU) + residual + LN ------------------------------------------
    hmid = jnp.dot(x1.astype(jnp.bfloat16), w1_ref[...],
                   preferred_element_type=jnp.float32) + b1_ref[...]
    hmid = jax.nn.gelu(hmid)                                            # tanh approx (EUP)
    ffn = jnp.dot(hmid.astype(jnp.bfloat16), w2_ref[...],
                  preferred_element_type=jnp.float32) + b2_ref[...]
    out = _ln(x1 + ffn, ln2_ref[0:1, :], ln2_ref[1:2, :])
    o_ref[0] = out.astype(o_ref.dtype)


def encoder_layer(x, kbias, layer, emb_ln, num_heads, apply_input_ln):
    B, S, H = x.shape
    I = layer["W1"].shape[1]
    kernel = functools.partial(_encoder_layer_kernel, num_heads=num_heads,
                               apply_input_ln=apply_input_ln)
    return pl.pallas_call(
        kernel,
        out_shape=jax.ShapeDtypeStruct((B, S, H), jnp.bfloat16),
        grid=(B,),
        in_specs=[
            pl.BlockSpec((1, S, H), lambda b: (b, 0, 0)),       # activations
            pl.BlockSpec((1, 1, S), lambda b: (b, 0, 0)),       # key-padding bias
            pl.BlockSpec((2, H), lambda b: (0, 0)),             # embedding LN params
            pl.BlockSpec((H, 3 * H), lambda b: (0, 0)),         # Wqkv
            pl.BlockSpec((1, 3 * H), lambda b: (0, 0)),         # bqkv
            pl.BlockSpec((H, H), lambda b: (0, 0)),             # Wo
            pl.BlockSpec((1, H), lambda b: (0, 0)),             # bo
            pl.BlockSpec((2, H), lambda b: (0, 0)),             # ln1
            pl.BlockSpec((H, I), lambda b: (0, 0)),             # W1
            pl.BlockSpec((1, I), lambda b: (0, 0)),             # b1
            pl.BlockSpec((I, H), lambda b: (0, 0)),             # W2
            pl.BlockSpec((1, H), lambda b: (0, 0)),             # b2
            pl.BlockSpec((2, H), lambda b: (0, 0)),             # ln2
        ],
        out_specs=pl.BlockSpec((1, S, H), lambda b: (b, 0, 0)),
        compiler_params=pltpu.CompilerParams(
            dimension_semantics=("parallel",),
            vmem_limit_bytes=_VMEM_LIMIT),
    )(x, kbias, emb_ln, layer["Wqkv"], layer["bqkv"], layer["Wo"], layer["bo"],
      layer["ln1"], layer["W1"], layer["b1"], layer["W2"], layer["b2"],
      layer["ln2"])


# ----------------------------------------------------------------------------
# Fused projection head + all task heads
# ----------------------------------------------------------------------------
def _heads_kernel(cls_ref, p1_ref, pb1_ref, p2_ref, pb2_ref, wt_ref, bt_ref,
                  z_ref, t_ref):
    c = cls_ref[...].astype(jnp.float32)
    c_bf = c.astype(jnp.bfloat16)
    # projection head: Linear -> ReLU -> Linear (intermediate stays in VMEM)
    h1 = jnp.dot(c_bf, p1_ref[...], preferred_element_type=jnp.float32) + pb1_ref[...]
    h1 = jnp.maximum(h1, 0.0)
    z = jnp.dot(h1.astype(jnp.bfloat16), p2_ref[...],
                preferred_element_type=jnp.float32) + pb2_ref[...]
    z_ref[...] = z.astype(z_ref.dtype)
    # all task heads as one lane-dense (128-padded) matmul, cls read once
    t = jnp.dot(c_bf, wt_ref[...], preferred_element_type=jnp.float32) + bt_ref[...]
    t_ref[...] = t.astype(t_ref.dtype)


def heads_forward(cls, p):
    B, H = cls.shape
    TP = p["task_w"].shape[1]
    return pl.pallas_call(
        _heads_kernel,
        out_shape=(jax.ShapeDtypeStruct((B, H), jnp.float32),
                   jax.ShapeDtypeStruct((B, TP), jnp.float32)),
        grid=(1,),
        in_specs=[
            pl.BlockSpec((B, H), lambda i: (0, 0)),
            pl.BlockSpec((H, H), lambda i: (0, 0)),
            pl.BlockSpec((1, H), lambda i: (0, 0)),
            pl.BlockSpec((H, H), lambda i: (0, 0)),
            pl.BlockSpec((1, H), lambda i: (0, 0)),
            pl.BlockSpec((H, TP), lambda i: (0, 0)),
            pl.BlockSpec((1, TP), lambda i: (0, 0)),
        ],
        out_specs=(pl.BlockSpec((B, H), lambda i: (0, 0)),
                   pl.BlockSpec((B, TP), lambda i: (0, 0))),
        compiler_params=pltpu.CompilerParams(
            dimension_semantics=("arbitrary",),
            vmem_limit_bytes=_VMEM_LIMIT),
    )(cls, p["P1"], p["pb1"], p["P2"], p["pb2"], p["task_w"], p["task_b"])


# ----------------------------------------------------------------------------
# Deterministic parameter construction (pre-packed, lane-dense)
# ----------------------------------------------------------------------------
def init_params(key, cfg):
    H, I = cfg["hidden"], cfg["intermediate"]
    V, Smax, L, T = cfg["vocab"], cfg["max_pos"], cfg["layers"], cfg["num_tasks"]
    nh = cfg["heads"]
    d = H // nh
    scale = 1.0 / float(d) ** 0.5

    def normal(k, shape):
        return 0.02 * jax.random.normal(k, shape, dtype=jnp.float32)

    keys = iter(jax.random.split(key, 3 + 6 * L + 2 + T))

    def ln_params():
        return jnp.stack([jnp.ones((H,), jnp.float32), jnp.zeros((H,), jnp.float32)])

    p = {
        "word_emb": normal(next(keys), (V, H)),
        "pos_emb": normal(next(keys), (Smax, H)),
        "type_emb": normal(next(keys), (2, H)),
        "emb_ln": ln_params(),
        "layers": [],
    }
    for _ in range(L):
        Wq, Wk, Wv = (normal(next(keys), (H, H)) for _ in range(3))
        Wo = normal(next(keys), (H, H))
        W1 = normal(next(keys), (H, I))
        W2 = normal(next(keys), (I, H))
        bq = bk = bv = jnp.zeros((1, H), jnp.float32)
        layer = {
            # lane-dense fused QKV; 1/sqrt(d) softmax scale baked into the q block
            "Wqkv": jnp.concatenate([Wq * scale, Wk, Wv], axis=1).astype(jnp.bfloat16),
            "bqkv": jnp.concatenate([bq * scale, bk, bv], axis=1),
            "Wo": Wo.astype(jnp.bfloat16),
            "bo": jnp.zeros((1, H), jnp.float32),
            "ln1": ln_params(),
            "W1": W1.astype(jnp.bfloat16),
            "b1": jnp.zeros((1, I), jnp.float32),
            "W2": W2.astype(jnp.bfloat16),
            "b2": jnp.zeros((1, H), jnp.float32),
            "ln2": ln_params(),
        }
        p["layers"].append(layer)

    # projection_head: Linear(H,H) -> ReLU -> Linear(H,H)
    p["P1"] = normal(next(keys), (H, H)).astype(jnp.bfloat16)
    p["pb1"] = jnp.zeros((1, H), jnp.float32)
    p["P2"] = normal(next(keys), (H, H)).astype(jnp.bfloat16)
    p["pb2"] = jnp.zeros((1, H), jnp.float32)
    # task_heads: num_tasks x Linear(H, 2), concatenated and padded to a
    # lane-dense 128-column slab (unmasked stores); sliced back in the wrapper.
    task_ws = [normal(next(keys), (H, 2)) for _ in range(T)]
    tw = jnp.concatenate(task_ws, axis=1)                    # (H, 2T)
    TP = ((2 * T + 127) // 128) * 128
    p["task_w"] = jnp.pad(tw, ((0, 0), (0, TP - 2 * T))).astype(jnp.bfloat16)
    p["task_b"] = jnp.zeros((1, TP), jnp.float32)
    return p


# ----------------------------------------------------------------------------
# Forward pass (mirrors LaciumFlowerModel.forward)
# ----------------------------------------------------------------------------
def lacium_flower_forward(params, input_ids, attention_mask, cfg):
    B, S = input_ids.shape
    H, nh = cfg["hidden"], cfg["heads"]

    # --- embeddings (gathers are wrapper glue; LN is fused into layer 0)
    x = (jnp.take(params["word_emb"], input_ids, axis=0)
         + params["pos_emb"][None, :S, :]
         + params["type_emb"][0][None, None, :])
    x = x.astype(jnp.bfloat16)                               # (B, S, H) bf16 activations

    # --- per-sample additive key-padding bias, (B, 1, S) -- no dense (BS,BS) matrix
    kbias = (1.0 - attention_mask.astype(jnp.float32))[:, None, :] * -1e9

    # --- transformer encoder: one fused pallas_call per layer, batch on the grid
    for li, layer in enumerate(params["layers"]):
        x = encoder_layer(x, kbias, layer, params["emb_ln"], nh,
                          apply_input_ln=(li == 0))

    # --- cls_output = last_hidden_state[:, 0]
    cls = x[:, 0, :]                                         # (B, H) bf16

    # --- projection head + all task heads in one fused call
    z, t_all = heads_forward(cls, params)
    T = cfg["num_tasks"]
    task_outputs = [t_all[:, 2 * t: 2 * (t + 1)] for t in range(T)]
    return z, task_outputs


# ----------------------------------------------------------------------------
# Main
# ----------------------------------------------------------------------------
if __name__ == "__main__":
    cfg = dict(hidden=32, heads=4, intermediate=64, vocab=100, max_pos=16,
               layers=2, num_tasks=3)
    B, S = 2, 8

    root = jax.random.PRNGKey(0)
    k_param, k_ids = jax.random.split(root)
    params = init_params(k_param, cfg)

    input_ids = jax.random.randint(k_ids, (B, S), 0, cfg["vocab"], dtype=jnp.int32)
    attention_mask = jnp.array(
        [[1, 1, 1, 1, 1, 1, 1, 1],
         [1, 1, 1, 1, 1, 0, 0, 0]], dtype=jnp.int32)

    fwd = jax.jit(functools.partial(lacium_flower_forward, cfg=cfg))
    z, task_outputs = fwd(params, input_ids, attention_mask)
    jax.block_until_ready(z)
    for t in task_outputs:
        jax.block_until_ready(t)

    assert z.shape == (B, cfg["hidden"])
    assert len(task_outputs) == cfg["num_tasks"]
    assert all(t.shape == (B, 2) for t in task_outputs)
    assert bool(jnp.all(jnp.isfinite(z)))
    print("KERNEL_OK")
</pallas_src>

<mosaic_0001>
module attributes {stable_mosaic.version = 11 : i64} {
  func.func @_encoder_layer_kernel(%arg0: i32, %arg1: memref<1x8x32xbf16, #tpu.memory_space<vmem>>, %arg2: memref<1x1x8xf32, #tpu.memory_space<vmem>>, %arg3: memref<2x32xf32, #tpu.memory_space<vmem>>, %arg4: memref<32x96xbf16, #tpu.memory_space<vmem>>, %arg5: memref<1x96xf32, #tpu.memory_space<vmem>>, %arg6: memref<32x32xbf16, #tpu.memory_space<vmem>>, %arg7: memref<1x32xf32, #tpu.memory_space<vmem>>, %arg8: memref<2x32xf32, #tpu.memory_space<vmem>>, %arg9: memref<32x64xbf16, #tpu.memory_space<vmem>>, %arg10: memref<1x64xf32, #tpu.memory_space<vmem>>, %arg11: memref<64x32xbf16, #tpu.memory_space<vmem>>, %arg12: memref<1x32xf32, #tpu.memory_space<vmem>>, %arg13: memref<2x32xf32, #tpu.memory_space<vmem>>, %arg14: memref<1x8x32xbf16, #tpu.memory_space<vmem>>) attributes {dimension_semantics = [#tpu.dimension_semantics<parallel>], iteration_bounds = array<i64: 2>, scalar_prefetch = 0 : i64, scratch_operands = 0 : i64, tpu.core_type = #tpu.core_type<tc>, window_params = [{transform_indices = @transform_0, window_bounds = array<i64: 1, 8, 32>}, {transform_indices = @transform_1, window_bounds = array<i64: 1, 1, 8>}, {pipeline_mode = #tpu.pipeline_mode<synchronous>, transform_indices = @transform_2, window_bounds = array<i64: 2, 32>}, {pipeline_mode = #tpu.pipeline_mode<synchronous>, transform_indices = @transform_3, window_bounds = array<i64: 32, 96>}, {pipeline_mode = #tpu.pipeline_mode<synchronous>, transform_indices = @transform_4, window_bounds = array<i64: 1, 96>}, {pipeline_mode = #tpu.pipeline_mode<synchronous>, transform_indices = @transform_5, window_bounds = array<i64: 32, 32>}, {pipeline_mode = #tpu.pipeline_mode<synchronous>, transform_indices = @transform_6, window_bounds = array<i64: 1, 32>}, {pipeline_mode = #tpu.pipeline_mode<synchronous>, transform_indices = @transform_7, window_bounds = array<i64: 2, 32>}, {pipeline_mode = #tpu.pipeline_mode<synchronous>, transform_indices = @transform_8, window_bounds = array<i64: 32, 64>}, {pipeline_mode = #tpu.pipeline_mode<synchronous>, transform_indices = @transform_9, window_bounds = array<i64: 1, 64>}, {pipeline_mode = #tpu.pipeline_mode<synchronous>, transform_indices = @transform_10, window_bounds = array<i64: 64, 32>}, {pipeline_mode = #tpu.pipeline_mode<synchronous>, transform_indices = @transform_11, window_bounds = array<i64: 1, 32>}, {pipeline_mode = #tpu.pipeline_mode<synchronous>, transform_indices = @transform_12, window_bounds = array<i64: 2, 32>}, {transform_indices = @transform_13, window_bounds = array<i64: 1, 8, 32>}]} {
    %c0 = arith.constant 0 : index
    %c0_0 = arith.constant 0 : index
    %c0_1 = arith.constant 0 : index
    %0 = vector.load %arg1[%c0, %c0_0, %c0_1] : memref<1x8x32xbf16, #tpu.memory_space<vmem>>, vector<1x8x32xbf16>
    %1 = vector.shape_cast %0 : vector<1x8x32xbf16> to vector<8x32xbf16>
    %2 = arith.extf %1 : vector<8x32xbf16> to vector<8x32xf32>
    %3 = arith.truncf %2 : vector<8x32xf32> to vector<8x32xbf16>
    %c0_2 = arith.constant 0 : index
    %c0_3 = arith.constant 0 : index
    %4 = vector.load %arg4[%c0_2, %c0_3] : memref<32x96xbf16, #tpu.memory_space<vmem>>, vector<32x96xbf16>
    %cst = arith.constant dense<0.000000e+00> : vector<8x96xf32>
    %5 = tpu.matmul %3, %4, %cst {dimension_numbers = #tpu.dot_dimension_numbers<[1], [0], [0], [1], [0, 0, 1, 1], [], []>} : vector<8x32xbf16>, vector<32x96xbf16>, vector<8x96xf32> -> vector<8x96xf32>
    %c0_4 = arith.constant 0 : index
    %c0_5 = arith.constant 0 : index
    %6 = vector.load %arg5[%c0_4, %c0_5] : memref<1x96xf32, #tpu.memory_space<vmem>>, vector<1x96xf32>
    %7 = vector.broadcast %6 : vector<1x96xf32> to vector<8x96xf32>
    %8 = arith.addf %5, %7 : vector<8x96xf32>
    %9 = vector.extract_strided_slice %8 {offsets = [0, 0], sizes = [8, 32], strides = [1, 1]} : vector<8x96xf32> to vector<8x32xf32>
    %10 = vector.shape_cast %9 : vector<8x32xf32> to vector<8x4x8xf32>
    %11 = tpu.transpose %10, [1, 0, 2] : vector<8x4x8xf32> -> vector<4x8x8xf32>
    %12 = vector.extract_strided_slice %8 {offsets = [0, 32], sizes = [8, 32], strides = [1, 1]} : vector<8x96xf32> to vector<8x32xf32>
    %13 = vector.shape_cast %12 : vector<8x32xf32> to vector<8x4x8xf32>
    %14 = tpu.transpose %13, [1, 0, 2] : vector<8x4x8xf32> -> vector<4x8x8xf32>
    %15 = vector.extract_strided_slice %8 {offsets = [0, 64], sizes = [8, 32], strides = [1, 1]} : vector<8x96xf32> to vector<8x32xf32>
    %16 = vector.shape_cast %15 : vector<8x32xf32> to vector<8x4x8xf32>
    %17 = tpu.transpose %16, [1, 0, 2] : vector<8x4x8xf32> -> vector<4x8x8xf32>
    "tpu.trace_start"() <{level = 10 : i32, message = "hqd,hkd->hqk"}> : () -> ()
    %cst_6 = arith.constant dense<0.000000e+00> : vector<4x8x8xf32>
    %18 = tpu.matmul %11, %14, %cst_6 {dimension_numbers = #tpu.dot_dimension_numbers<[2], [2], [1], [1], [0, 0, 0, 1, 1, 1], [0], [0]>} : vector<4x8x8xf32>, vector<4x8x8xf32>, vector<4x8x8xf32> -> vector<4x8x8xf32>
    "tpu.trace_stop"() : () -> ()
    %c0_7 = arith.constant 0 : index
    %c0_8 = arith.constant 0 : index
    %c0_9 = arith.constant 0 : index
    %19 = vector.load %arg2[%c0_7, %c0_8, %c0_9] : memref<1x1x8xf32, #tpu.memory_space<vmem>>, vector<1x1x8xf32>
    %20 = vector.broadcast %19 : vector<1x1x8xf32> to vector<4x8x8xf32>
    %21 = arith.addf %18, %20 : vector<4x8x8xf32>
    %cst_10 = arith.constant dense<0xFF800000> : vector<4x8xf32>
    %22 = vector.multi_reduction <maximumf>, %21, %cst_10 [2] : vector<4x8x8xf32> to vector<4x8xf32>
    %23 = vector.shape_cast %22 : vector<4x8xf32> to vector<4x8x1xf32>
    %24 = vector.broadcast %23 : vector<4x8x1xf32> to vector<4x8x8xf32>
    %25 = arith.subf %21, %24 : vector<4x8x8xf32>
    %26 = math.exp %25 : vector<4x8x8xf32>
    %cst_11 = arith.constant dense<0.000000e+00> : vector<4x8xf32>
    %27 = vector.multi_reduction <add>, %26, %cst_11 [2] : vector<4x8x8xf32> to vector<4x8xf32>
    %28 = vector.shape_cast %27 : vector<4x8xf32> to vector<4x8x1xf32>
    %29 = tpu.reciprocal %28 {approx = true} : vector<4x8x1xf32> -> vector<4x8x1xf32>
    %30 = vector.broadcast %29 : vector<4x8x1xf32> to vector<4x8x8xf32>
    %31 = arith.mulf %26, %30 : vector<4x8x8xf32>
    %32 = arith.truncf %31 : vector<4x8x8xf32> to vector<4x8x8xbf16>
    %33 = arith.truncf %17 : vector<4x8x8xf32> to vector<4x8x8xbf16>
    "tpu.trace_start"() <{level = 10 : i32, message = "hqk,hkd->hqd"}> : () -> ()
    %cst_12 = arith.constant dense<0.000000e+00> : vector<4x8x8xf32>
    %34 = tpu.matmul %32, %33, %cst_12 {dimension_numbers = #tpu.dot_dimension_numbers<[2], [1], [1], [2], [0, 0, 0, 1, 1, 2], [0], [0]>} : vector<4x8x8xbf16>, vector<4x8x8xbf16>, vector<4x8x8xf32> -> vector<4x8x8xf32>
    "tpu.trace_stop"() : () -> ()
    %35 = tpu.transpose %34, [1, 0, 2] : vector<4x8x8xf32> -> vector<8x4x8xf32>
    %36 = vector.shape_cast %35 : vector<8x4x8xf32> to vector<8x32xf32>
    %37 = arith.truncf %36 : vector<8x32xf32> to vector<8x32xbf16>
    %c0_13 = arith.constant 0 : index
    %c0_14 = arith.constant 0 : index
    %38 = vector.load %arg6[%c0_13, %c0_14] : memref<32x32xbf16, #tpu.memory_space<vmem>>, vector<32x32xbf16>
    %cst_15 = arith.constant dense<0.000000e+00> : vector<8x32xf32>
    %39 = tpu.matmul %37, %38, %cst_15 {dimension_numbers = #tpu.dot_dimension_numbers<[1], [0], [0], [1], [0, 0, 1, 1], [], []>} : vector<8x32xbf16>, vector<32x32xbf16>, vector<8x32xf32> -> vector<8x32xf32>
    %c0_16 = arith.constant 0 : index
    %c0_17 = arith.constant 0 : index
    %40 = vector.load %arg7[%c0_16, %c0_17] : memref<1x32xf32, #tpu.memory_space<vmem>>, vector<1x32xf32>
    %41 = vector.broadcast %40 : vector<1x32xf32> to vector<8x32xf32>
    %42 = arith.addf %39, %41 : vector<8x32xf32>
    %43 = arith.addf %2, %42 : vector<8x32xf32>
    %c0_18 = arith.constant 0 : index
    %c0_19 = arith.constant 0 : index
    %44 = vector.load %arg8[%c0_18, %c0_19] : memref<2x32xf32, #tpu.memory_space<vmem>>, vector<1x32xf32>
    %c1 = arith.constant 1 : index
    %c0_20 = arith.constant 0 : index
    %45 = vector.load %arg8[%c1, %c0_20] : memref<2x32xf32, #tpu.memory_space<vmem>>, vector<1x32xf32>
    %cst_21 = arith.constant dense<0.000000e+00> : vector<8xf32>
    %46 = vector.multi_reduction <add>, %43, %cst_21 [1] : vector<8x32xf32> to vector<8xf32>
    %47 = vector.shape_cast %46 : vector<8xf32> to vector<8x1xf32>
    %cst_22 = arith.constant 3.200000e+01 : f32
    %48 = vector.broadcast %cst_22 : f32 to vector<8x1xf32>
    %49 = arith.divf %47, %48 : vector<8x1xf32>
    %50 = vector.broadcast %49 : vector<8x1xf32> to vector<8x32xf32>
    %51 = arith.subf %43, %50 : vector<8x32xf32>
    %52 = arith.mulf %51, %51 : vector<8x32xf32>
    %cst_23 = arith.constant dense<0.000000e+00> : vector<8xf32>
    %53 = vector.multi_reduction <add>, %52, %cst_23 [1] : vector<8x32xf32> to vector<8xf32>
    %54 = vector.shape_cast %53 : vector<8xf32> to vector<8x1xf32>
    %cst_24 = arith.constant 3.200000e+01 : f32
    %55 = vector.broadcast %cst_24 : f32 to vector<8x1xf32>
    %56 = arith.divf %54, %55 : vector<8x1xf32>
    %57 = vector.broadcast %49 : vector<8x1xf32> to vector<8x32xf32>
    %58 = arith.subf %43, %57 : vector<8x32xf32>
    %cst_25 = arith.constant 9.99999996E-13 : f32
    %59 = vector.broadcast %cst_25 : f32 to vector<8x1xf32>
    %60 = arith.addf %56, %59 : vector<8x1xf32>
    %61 = math.rsqrt %60 : vector<8x1xf32>
    %62 = vector.broadcast %61 : vector<8x1xf32> to vector<8x32xf32>
    %63 = arith.mulf %58, %62 : vector<8x32xf32>
    %64 = vector.broadcast %44 : vector<1x32xf32> to vector<8x32xf32>
    %65 = arith.mulf %63, %64 : vector<8x32xf32>
    %66 = vector.broadcast %45 : vector<1x32xf32> to vector<8x32xf32>
    %67 = arith.addf %65, %66 : vector<8x32xf32>
    %68 = arith.truncf %67 : vector<8x32xf32> to vector<8x32xbf16>
    %c0_26 = arith.constant 0 : index
    %c0_27 = arith.constant 0 : index
    %69 = vector.load %arg9[%c0_26, %c0_27] : memref<32x64xbf16, #tpu.memory_space<vmem>>, vector<32x64xbf16>
    %cst_28 = arith.constant dense<0.000000e+00> : vector<8x64xf32>
    %70 = tpu.matmul %68, %69, %cst_28 {dimension_numbers = #tpu.dot_dimension_numbers<[1], [0], [0], [1], [0, 0, 1, 1], [], []>} : vector<8x32xbf16>, vector<32x64xbf16>, vector<8x64xf32> -> vector<8x64xf32>
    %c0_29 = arith.constant 0 : index
    %c0_30 = arith.constant 0 : index
    %71 = vector.load %arg10[%c0_29, %c0_30] : memref<1x64xf32, #tpu.memory_space<vmem>>, vector<1x64xf32>
    %72 = vector.broadcast %71 : vector<1x64xf32> to vector<8x64xf32>
    %73 = arith.addf %70, %72 : vector<8x64xf32>
    %74 = arith.mulf %73, %73 : vector<8x64xf32>
    %75 = arith.mulf %73, %74 : vector<8x64xf32>
    %cst_31 = arith.constant 4.471500e-02 : f32
    %76 = vector.broadcast %cst_31 : f32 to vector<8x64xf32>
    %77 = arith.mulf %76, %75 : vector<8x64xf32>
    %78 = arith.addf %73, %77 : vector<8x64xf32>
    %cst_32 = arith.constant 0.797884583 : f32
    %79 = vector.broadcast %cst_32 : f32 to vector<8x64xf32>
    %80 = arith.mulf %79, %78 : vector<8x64xf32>
    %81 = math.tanh %80 : vector<8x64xf32>
    %cst_33 = arith.constant 1.000000e+00 : f32
    %82 = vector.broadcast %cst_33 : f32 to vector<8x64xf32>
    %83 = arith.addf %82, %81 : vector<8x64xf32>
    %cst_34 = arith.constant 5.000000e-01 : f32
    %84 = vector.broadcast %cst_34 : f32 to vector<8x64xf32>
    %85 = arith.mulf %84, %83 : vector<8x64xf32>
    %86 = arith.mulf %73, %85 : vector<8x64xf32>
    %87 = arith.truncf %86 : vector<8x64xf32> to vector<8x64xbf16>
    %c0_35 = arith.constant 0 : index
    %c0_36 = arith.constant 0 : index
    %88 = vector.load %arg11[%c0_35, %c0_36] : memref<64x32xbf16, #tpu.memory_space<vmem>>, vector<64x32xbf16>
    %cst_37 = arith.constant dense<0.000000e+00> : vector<8x32xf32>
    %89 = tpu.matmul %87, %88, %cst_37 {dimension_numbers = #tpu.dot_dimension_numbers<[1], [0], [0], [1], [0, 0, 1, 1], [], []>} : vector<8x64xbf16>, vector<64x32xbf16>, vector<8x32xf32> -> vector<8x32xf32>
    %c0_38 = arith.constant 0 : index
    %c0_39 = arith.constant 0 : index
    %90 = vector.load %arg12[%c0_38, %c0_39] : memref<1x32xf32, #tpu.memory_space<vmem>>, vector<1x32xf32>
    %91 = vector.broadcast %90 : vector<1x32xf32> to vector<8x32xf32>
    %92 = arith.addf %89, %91 : vector<8x32xf32>
    %93 = arith.addf %67, %92 : vector<8x32xf32>
    %c0_40 = arith.constant 0 : index
    %c0_41 = arith.constant 0 : index
    %94 = vector.load %arg13[%c0_40, %c0_41] : memref<2x32xf32, #tpu.memory_space<vmem>>, vector<1x32xf32>
    %c1_42 = arith.constant 1 : index
    %c0_43 = arith.constant 0 : index
    %95 = vector.load %arg13[%c1_42, %c0_43] : memref<2x32xf32, #tpu.memory_space<vmem>>, vector<1x32xf32>
    %cst_44 = arith.constant dense<0.000000e+00> : vector<8xf32>
    %96 = vector.multi_reduction <add>, %93, %cst_44 [1] : vector<8x32xf32> to vector<8xf32>
    %97 = vector.shape_cast %96 : vector<8xf32> to vector<8x1xf32>
    %cst_45 = arith.constant 3.200000e+01 : f32
    %98 = vector.broadcast %cst_45 : f32 to vector<8x1xf32>
    %99 = arith.divf %97, %98 : vector<8x1xf32>
    %100 = vector.broadcast %99 : vector<8x1xf32> to vector<8x32xf32>
    %101 = arith.subf %93, %100 : vector<8x32xf32>
    %102 = arith.mulf %101, %101 : vector<8x32xf32>
    %cst_46 = arith.constant dense<0.000000e+00> : vector<8xf32>
    %103 = vector.multi_reduction <add>, %102, %cst_46 [1] : vector<8x32xf32> to vector<8xf32>
    %104 = vector.shape_cast %103 : vector<8xf32> to vector<8x1xf32>
    %cst_47 = arith.constant 3.200000e+01 : f32
    %105 = vector.broadcast %cst_47 : f32 to vector<8x1xf32>
    %106 = arith.divf %104, %105 : vector<8x1xf32>
    %107 = vector.broadcast %99 : vector<8x1xf32> to vector<8x32xf32>
    %108 = arith.subf %93, %107 : vector<8x32xf32>
    %cst_48 = arith.constant 9.99999996E-13 : f32
    %109 = vector.broadcast %cst_48 : f32 to vector<8x1xf32>
    %110 = arith.addf %106, %109 : vector<8x1xf32>
    %111 = math.rsqrt %110 : vector<8x1xf32>
    %112 = vector.broadcast %111 : vector<8x1xf32> to vector<8x32xf32>
    %113 = arith.mulf %108, %112 : vector<8x32xf32>
    %114 = vector.broadcast %94 : vector<1x32xf32> to vector<8x32xf32>
    %115 = arith.mulf %113, %114 : vector<8x32xf32>
    %116 = vector.broadcast %95 : vector<1x32xf32> to vector<8x32xf32>
    %117 = arith.addf %115, %116 : vector<8x32xf32>
    %118 = arith.truncf %117 : vector<8x32xf32> to vector<8x32xbf16>
    %c0_49 = arith.constant 0 : index
    %c0_50 = arith.constant 0 : index
    %c0_51 = arith.constant 0 : index
    %119 = vector.load %arg14[%c0_49, %c0_50, %c0_51] : memref<1x8x32xbf16, #tpu.memory_space<vmem>>, vector<1x8x32xbf16>
    %120 = vector.shape_cast %119 : vector<1x8x32xbf16> to vector<8x32xbf16>
    %121 = vector.shape_cast %118 : vector<8x32xbf16> to vector<1x8x32xbf16>
    tpu.vector_store %arg14[%c0_49, %c0_50, %c0_51], %121 {strides = array<i32>} : memref<1x8x32xbf16, #tpu.memory_space<vmem>>, vector<1x8x32xbf16>,
    return
  }
  func.func @transform_0(%arg0: i32) -> (i32, i32, i32) {
    %c0_i32 = arith.constant 0 : i32
    %c0_i32_0 = arith.constant 0 : i32
    %c0_i32_1 = arith.constant 0 : i32
    return %arg0, %c0_i32, %c0_i32_0 : i32, i32, i32
  }
  func.func @transform_1(%arg0: i32) -> (i32, i32, i32) {
    %c0_i32 = arith.constant 0 : i32
    %c0_i32_0 = arith.constant 0 : i32
    %c0_i32_1 = arith.constant 0 : i32
    return %arg0, %c0_i32, %c0_i32_0 : i32, i32, i32
  }
  func.func @transform_2(%arg0: i32) -> (i32, i32) {
    %c0_i32 = arith.constant 0 : i32
    %c0_i32_0 = arith.constant 0 : i32
    %c0_i32_1 = arith.constant 0 : i32
    return %c0_i32, %c0_i32_0 : i32, i32
  }
  func.func @transform_3(%arg0: i32) -> (i32, i32) {
    %c0_i32 = arith.constant 0 : i32
    %c0_i32_0 = arith.constant 0 : i32
    %c0_i32_1 = arith.constant 0 : i32
    return %c0_i32, %c0_i32_0 : i32, i32
  }
  func.func @transform_4(%arg0: i32) -> (i32, i32) {
    %c0_i32 = arith.constant 0 : i32
    %c0_i32_0 = arith.constant 0 : i32
    %c0_i32_1 = arith.constant 0 : i32
    return %c0_i32, %c0_i32_0 : i32, i32
  }
  func.func @transform_5(%arg0: i32) -> (i32, i32) {
    %c0_i32 = arith.constant 0 : i32
    %c0_i32_0 = arith.constant 0 : i32
    %c0_i32_1 = arith.constant 0 : i32
    return %c0_i32, %c0_i32_0 : i32, i32
  }
  func.func @transform_6(%arg0: i32) -> (i32, i32) {
    %c0_i32 = arith.constant 0 : i32
    %c0_i32_0 = arith.constant 0 : i32
    %c0_i32_1 = arith.constant 0 : i32
    return %c0_i32, %c0_i32_0 : i32, i32
  }
  func.func @transform_7(%arg0: i32) -> (i32, i32) {
    %c0_i32 = arith.constant 0 : i32
    %c0_i32_0 = arith.constant 0 : i32
    %c0_i32_1 = arith.constant 0 : i32
    return %c0_i32, %c0_i32_0 : i32, i32
  }
  func.func @transform_8(%arg0: i32) -> (i32, i32) {
    %c0_i32 = arith.constant 0 : i32
    %c0_i32_0 = arith.constant 0 : i32
    %c0_i32_1 = arith.constant 0 : i32
    return %c0_i32, %c0_i32_0 : i32, i32
  }
  func.func @transform_9(%arg0: i32) -> (i32, i32) {
    %c0_i32 = arith.constant 0 : i32
    %c0_i32_0 = arith.constant 0 : i32
    %c0_i32_1 = arith.constant 0 : i32
    return %c0_i32, %c0_i32_0 : i32, i32
  }
  func.func @transform_10(%arg0: i32) -> (i32, i32) {
    %c0_i32 = arith.constant 0 : i32
    %c0_i32_0 = arith.constant 0 : i32
    %c0_i32_1 = arith.constant 0 : i32
    return %c0_i32, %c0_i32_0 : i32, i32
  }
  func.func @transform_11(%arg0: i32) -> (i32, i32) {
    %c0_i32 = arith.constant 0 : i32
    %c0_i32_0 = arith.constant 0 : i32
    %c0_i32_1 = arith.constant 0 : i32
    return %c0_i32, %c0_i32_0 : i32, i32
  }
  func.func @transform_12(%arg0: i32) -> (i32, i32) {
    %c0_i32 = arith.constant 0 : i32
    %c0_i32_0 = arith.constant 0 : i32
    %c0_i32_1 = arith.constant 0 : i32
    return %c0_i32, %c0_i32_0 : i32, i32
  }
  func.func @transform_13(%arg0: i32) -> (i32, i32, i32) {
    %c0_i32 = arith.constant 0 : i32
    %c0_i32_0 = arith.constant 0 : i32
    %c0_i32_1 = arith.constant 0 : i32
    return %arg0, %c0_i32, %c0_i32_0 : i32, i32, i32
  }
}

module attributes {stable_mosaic.version = 11 : i64} {
  func.func @_encoder_layer_kernel(%arg0: i32, %arg1: memref<1x8x32xbf16, #tpu.memory_space<vmem>>, %arg2: memref<1x1x8xf32, #tpu.memory_space<vmem>>, %arg3: memref<2x32xf32, #tpu.memory_space<vmem>>, %arg4: memref<32x96xbf16, #tpu.memory_space<vmem>>, %arg5: memref<1x96xf32, #tpu.memory_space<vmem>>, %arg6: memref<32x32xbf16, #tpu.memory_space<vmem>>, %arg7: memref<1x32xf32, #tpu.memory_space<vmem>>, %arg8: memref<2x32xf32, #tpu.memory_space<vmem>>, %arg9: memref<32x64xbf16, #tpu.memory_space<vmem>>, %arg10: memref<1x64xf32, #tpu.memory_space<vmem>>, %arg11: memref<64x32xbf16, #tpu.memory_space<vmem>>, %arg12: memref<1x32xf32, #tpu.memory_space<vmem>>, %arg13: memref<2x32xf32, #tpu.memory_space<vmem>>, %arg14: memref<1x8x32xbf16, #tpu.memory_space<vmem>>) attributes {dimension_semantics = [#tpu.dimension_semantics<parallel>], iteration_bounds = array<i64: 2>, scalar_prefetch = 0 : i64, scratch_operands = 0 : i64, tpu.core_type = #tpu.core_type<tc>, window_params = [{transform_indices = @transform_0, window_bounds = array<i64: 1, 8, 32>}, {transform_indices = @transform_1, window_bounds = array<i64: 1, 1, 8>}, {pipeline_mode = #tpu.pipeline_mode<synchronous>, transform_indices = @transform_2, window_bounds = array<i64: 2, 32>}, {pipeline_mode = #tpu.pipeline_mode<synchronous>, transform_indices = @transform_3, window_bounds = array<i64: 32, 96>}, {pipeline_mode = #tpu.pipeline_mode<synchronous>, transform_indices = @transform_4, window_bounds = array<i64: 1, 96>}, {pipeline_mode = #tpu.pipeline_mode<synchronous>, transform_indices = @transform_5, window_bounds = array<i64: 32, 32>}, {pipeline_mode = #tpu.pipeline_mode<synchronous>, transform_indices = @transform_6, window_bounds = array<i64: 1, 32>}, {pipeline_mode = #tpu.pipeline_mode<synchronous>, transform_indices = @transform_7, window_bounds = array<i64: 2, 32>}, {pipeline_mode = #tpu.pipeline_mode<synchronous>, transform_indices = @transform_8, window_bounds = array<i64: 32, 64>}, {pipeline_mode = #tpu.pipeline_mode<synchronous>, transform_indices = @transform_9, window_bounds = array<i64: 1, 64>}, {pipeline_mode = #tpu.pipeline_mode<synchronous>, transform_indices = @transform_10, window_bounds = array<i64: 64, 32>}, {pipeline_mode = #tpu.pipeline_mode<synchronous>, transform_indices = @transform_11, window_bounds = array<i64: 1, 32>}, {pipeline_mode = #tpu.pipeline_mode<synchronous>, transform_indices = @transform_12, window_bounds = array<i64: 2, 32>}, {transform_indices = @transform_13, window_bounds = array<i64: 1, 8, 32>}]} {
    %c0 = arith.constant 0 : index
    %c0_0 = arith.constant 0 : index
    %c0_1 = arith.constant 0 : index
    %0 = vector.load %arg1[%c0, %c0_0, %c0_1] : memref<1x8x32xbf16, #tpu.memory_space<vmem>>, vector<1x8x32xbf16>
    %1 = vector.shape_cast %0 : vector<1x8x32xbf16> to vector<8x32xbf16>
    %2 = arith.extf %1 : vector<8x32xbf16> to vector<8x32xf32>
    %c0_2 = arith.constant 0 : index
    %c0_3 = arith.constant 0 : index
    %3 = vector.load %arg3[%c0_2, %c0_3] : memref<2x32xf32, #tpu.memory_space<vmem>>, vector<1x32xf32>
    %c1 = arith.constant 1 : index
    %c0_4 = arith.constant 0 : index
    %4 = vector.load %arg3[%c1, %c0_4] : memref<2x32xf32, #tpu.memory_space<vmem>>, vector<1x32xf32>
    %cst = arith.constant dense<0.000000e+00> : vector<8xf32>
    %5 = vector.multi_reduction <add>, %2, %cst [1] : vector<8x32xf32> to vector<8xf32>
    %6 = vector.shape_cast %5 : vector<8xf32> to vector<8x1xf32>
    %cst_5 = arith.constant 3.200000e+01 : f32
    %7 = vector.broadcast %cst_5 : f32 to vector<8x1xf32>
    %8 = arith.divf %6, %7 : vector<8x1xf32>
    %9 = vector.broadcast %8 : vector<8x1xf32> to vector<8x32xf32>
    %10 = arith.subf %2, %9 : vector<8x32xf32>
    %11 = arith.mulf %10, %10 : vector<8x32xf32>
    %cst_6 = arith.constant dense<0.000000e+00> : vector<8xf32>
    %12 = vector.multi_reduction <add>, %11, %cst_6 [1] : vector<8x32xf32> to vector<8xf32>
    %13 = vector.shape_cast %12 : vector<8xf32> to vector<8x1xf32>
    %cst_7 = arith.constant 3.200000e+01 : f32
    %14 = vector.broadcast %cst_7 : f32 to vector<8x1xf32>
    %15 = arith.divf %13, %14 : vector<8x1xf32>
    %16 = vector.broadcast %8 : vector<8x1xf32> to vector<8x32xf32>
    %17 = arith.subf %2, %16 : vector<8x32xf32>
    %cst_8 = arith.constant 9.99999996E-13 : f32
    %18 = vector.broadcast %cst_8 : f32 to vector<8x1xf32>
    %19 = arith.addf %15, %18 : vector<8x1xf32>
    %20 = math.rsqrt %19 : vector<8x1xf32>
    %21 = vector.broadcast %20 : vector<8x1xf32> to vector<8x32xf32>
    %22 = arith.mulf %17, %21 : vector<8x32xf32>
    %23 = vector.broadcast %3 : vector<1x32xf32> to vector<8x32xf32>
    %24 = arith.mulf %22, %23 : vector<8x32xf32>
    %25 = vector.broadcast %4 : vector<1x32xf32> to vector<8x32xf32>
    %26 = arith.addf %24, %25 : vector<8x32xf32>
    %27 = arith.truncf %26 : vector<8x32xf32> to vector<8x32xbf16>
    %c0_9 = arith.constant 0 : index
    %c0_10 = arith.constant 0 : index
    %28 = vector.load %arg4[%c0_9, %c0_10] : memref<32x96xbf16, #tpu.memory_space<vmem>>, vector<32x96xbf16>
    %cst_11 = arith.constant dense<0.000000e+00> : vector<8x96xf32>
    %29 = tpu.matmul %27, %28, %cst_11 {dimension_numbers = #tpu.dot_dimension_numbers<[1], [0], [0], [1], [0, 0, 1, 1], [], []>} : vector<8x32xbf16>, vector<32x96xbf16>, vector<8x96xf32> -> vector<8x96xf32>
    %c0_12 = arith.constant 0 : index
    %c0_13 = arith.constant 0 : index
    %30 = vector.load %arg5[%c0_12, %c0_13] : memref<1x96xf32, #tpu.memory_space<vmem>>, vector<1x96xf32>
    %31 = vector.broadcast %30 : vector<1x96xf32> to vector<8x96xf32>
    %32 = arith.addf %29, %31 : vector<8x96xf32>
    %33 = vector.extract_strided_slice %32 {offsets = [0, 0], sizes = [8, 32], strides = [1, 1]} : vector<8x96xf32> to vector<8x32xf32>
    %34 = vector.shape_cast %33 : vector<8x32xf32> to vector<8x4x8xf32>
    %35 = tpu.transpose %34, [1, 0, 2] : vector<8x4x8xf32> -> vector<4x8x8xf32>
    %36 = vector.extract_strided_slice %32 {offsets = [0, 32], sizes = [8, 32], strides = [1, 1]} : vector<8x96xf32> to vector<8x32xf32>
    %37 = vector.shape_cast %36 : vector<8x32xf32> to vector<8x4x8xf32>
    %38 = tpu.transpose %37, [1, 0, 2] : vector<8x4x8xf32> -> vector<4x8x8xf32>
    %39 = vector.extract_strided_slice %32 {offsets = [0, 64], sizes = [8, 32], strides = [1, 1]} : vector<8x96xf32> to vector<8x32xf32>
    %40 = vector.shape_cast %39 : vector<8x32xf32> to vector<8x4x8xf32>
    %41 = tpu.transpose %40, [1, 0, 2] : vector<8x4x8xf32> -> vector<4x8x8xf32>
    "tpu.trace_start"() <{level = 10 : i32, message = "hqd,hkd->hqk"}> : () -> ()
    %cst_14 = arith.constant dense<0.000000e+00> : vector<4x8x8xf32>
    %42 = tpu.matmul %35, %38, %cst_14 {dimension_numbers = #tpu.dot_dimension_numbers<[2], [2], [1], [1], [0, 0, 0, 1, 1, 1], [0], [0]>} : vector<4x8x8xf32>, vector<4x8x8xf32>, vector<4x8x8xf32> -> vector<4x8x8xf32>
    "tpu.trace_stop"() : () -> ()
    %c0_15 = arith.constant 0 : index
    %c0_16 = arith.constant 0 : index
    %c0_17 = arith.constant 0 : index
    %43 = vector.load %arg2[%c0_15, %c0_16, %c0_17] : memref<1x1x8xf32, #tpu.memory_space<vmem>>, vector<1x1x8xf32>
    %44 = vector.broadcast %43 : vector<1x1x8xf32> to vector<4x8x8xf32>
    %45 = arith.addf %42, %44 : vector<4x8x8xf32>
    %cst_18 = arith.constant dense<0xFF800000> : vector<4x8xf32>
    %46 = vector.multi_reduction <maximumf>, %45, %cst_18 [2] : vector<4x8x8xf32> to vector<4x8xf32>
    %47 = vector.shape_cast %46 : vector<4x8xf32> to vector<4x8x1xf32>
    %48 = vector.broadcast %47 : vector<4x8x1xf32> to vector<4x8x8xf32>
    %49 = arith.subf %45, %48 : vector<4x8x8xf32>
    %50 = math.exp %49 : vector<4x8x8xf32>
    %cst_19 = arith.constant dense<0.000000e+00> : vector<4x8xf32>
    %51 = vector.multi_reduction <add>, %50, %cst_19 [2] : vector<4x8x8xf32> to vector<4x8xf32>
    %52 = vector.shape_cast %51 : vector<4x8xf32> to vector<4x8x1xf32>
    %53 = tpu.reciprocal %52 {approx = true} : vector<4x8x1xf32> -> vector<4x8x1xf32>
    %54 = vector.broadcast %53 : vector<4x8x1xf32> to vector<4x8x8xf32>
    %55 = arith.mulf %50, %54 : vector<4x8x8xf32>
    %56 = arith.truncf %55 : vector<4x8x8xf32> to vector<4x8x8xbf16>
    %57 = arith.truncf %41 : vector<4x8x8xf32> to vector<4x8x8xbf16>
    "tpu.trace_start"() <{level = 10 : i32, message = "hqk,hkd->hqd"}> : () -> ()
    %cst_20 = arith.constant dense<0.000000e+00> : vector<4x8x8xf32>
    %58 = tpu.matmul %56, %57, %cst_20 {dimension_numbers = #tpu.dot_dimension_numbers<[2], [1], [1], [2], [0, 0, 0, 1, 1, 2], [0], [0]>} : vector<4x8x8xbf16>, vector<4x8x8xbf16>, vector<4x8x8xf32> -> vector<4x8x8xf32>
    "tpu.trace_stop"() : () -> ()
    %59 = tpu.transpose %58, [1, 0, 2] : vector<4x8x8xf32> -> vector<8x4x8xf32>
    %60 = vector.shape_cast %59 : vector<8x4x8xf32> to vector<8x32xf32>
    %61 = arith.truncf %60 : vector<8x32xf32> to vector<8x32xbf16>
    %c0_21 = arith.constant 0 : index
    %c0_22 = arith.constant 0 : index
    %62 = vector.load %arg6[%c0_21, %c0_22] : memref<32x32xbf16, #tpu.memory_space<vmem>>, vector<32x32xbf16>
    %cst_23 = arith.constant dense<0.000000e+00> : vector<8x32xf32>
    %63 = tpu.matmul %61, %62, %cst_23 {dimension_numbers = #tpu.dot_dimension_numbers<[1], [0], [0], [1], [0, 0, 1, 1], [], []>} : vector<8x32xbf16>, vector<32x32xbf16>, vector<8x32xf32> -> vector<8x32xf32>
    %c0_24 = arith.constant 0 : index
    %c0_25 = arith.constant 0 : index
    %64 = vector.load %arg7[%c0_24, %c0_25] : memref<1x32xf32, #tpu.memory_space<vmem>>, vector<1x32xf32>
    %65 = vector.broadcast %64 : vector<1x32xf32> to vector<8x32xf32>
    %66 = arith.addf %63, %65 : vector<8x32xf32>
    %67 = arith.addf %26, %66 : vector<8x32xf32>
    %c0_26 = arith.constant 0 : index
    %c0_27 = arith.constant 0 : index
    %68 = vector.load %arg8[%c0_26, %c0_27] : memref<2x32xf32, #tpu.memory_space<vmem>>, vector<1x32xf32>
    %c1_28 = arith.constant 1 : index
    %c0_29 = arith.constant 0 : index
    %69 = vector.load %arg8[%c1_28, %c0_29] : memref<2x32xf32, #tpu.memory_space<vmem>>, vector<1x32xf32>
    %cst_30 = arith.constant dense<0.000000e+00> : vector<8xf32>
    %70 = vector.multi_reduction <add>, %67, %cst_30 [1] : vector<8x32xf32> to vector<8xf32>
    %71 = vector.shape_cast %70 : vector<8xf32> to vector<8x1xf32>
    %cst_31 = arith.constant 3.200000e+01 : f32
    %72 = vector.broadcast %cst_31 : f32 to vector<8x1xf32>
    %73 = arith.divf %71, %72 : vector<8x1xf32>
    %74 = vector.broadcast %73 : vector<8x1xf32> to vector<8x32xf32>
    %75 = arith.subf %67, %74 : vector<8x32xf32>
    %76 = arith.mulf %75, %75 : vector<8x32xf32>
    %cst_32 = arith.constant dense<0.000000e+00> : vector<8xf32>
    %77 = vector.multi_reduction <add>, %76, %cst_32 [1] : vector<8x32xf32> to vector<8xf32>
    %78 = vector.shape_cast %77 : vector<8xf32> to vector<8x1xf32>
    %cst_33 = arith.constant 3.200000e+01 : f32
    %79 = vector.broadcast %cst_33 : f32 to vector<8x1xf32>
    %80 = arith.divf %78, %79 : vector<8x1xf32>
    %81 = vector.broadcast %73 : vector<8x1xf32> to vector<8x32xf32>
    %82 = arith.subf %67, %81 : vector<8x32xf32>
    %cst_34 = arith.constant 9.99999996E-13 : f32
    %83 = vector.broadcast %cst_34 : f32 to vector<8x1xf32>
    %84 = arith.addf %80, %83 : vector<8x1xf32>
    %85 = math.rsqrt %84 : vector<8x1xf32>
    %86 = vector.broadcast %85 : vector<8x1xf32> to vector<8x32xf32>
    %87 = arith.mulf %82, %86 : vector<8x32xf32>
    %88 = vector.broadcast %68 : vector<1x32xf32> to vector<8x32xf32>
    %89 = arith.mulf %87, %88 : vector<8x32xf32>
    %90 = vector.broadcast %69 : vector<1x32xf32> to vector<8x32xf32>
    %91 = arith.addf %89, %90 : vector<8x32xf32>
    %92 = arith.truncf %91 : vector<8x32xf32> to vector<8x32xbf16>
    %c0_35 = arith.constant 0 : index
    %c0_36 = arith.constant 0 : index
    %93 = vector.load %arg9[%c0_35, %c0_36] : memref<32x64xbf16, #tpu.memory_space<vmem>>, vector<32x64xbf16>
    %cst_37 = arith.constant dense<0.000000e+00> : vector<8x64xf32>
    %94 = tpu.matmul %92, %93, %cst_37 {dimension_numbers = #tpu.dot_dimension_numbers<[1], [0], [0], [1], [0, 0, 1, 1], [], []>} : vector<8x32xbf16>, vector<32x64xbf16>, vector<8x64xf32> -> vector<8x64xf32>
    %c0_38 = arith.constant 0 : index
    %c0_39 = arith.constant 0 : index
    %95 = vector.load %arg10[%c0_38, %c0_39] : memref<1x64xf32, #tpu.memory_space<vmem>>, vector<1x64xf32>
    %96 = vector.broadcast %95 : vector<1x64xf32> to vector<8x64xf32>
    %97 = arith.addf %94, %96 : vector<8x64xf32>
    %98 = arith.mulf %97, %97 : vector<8x64xf32>
    %99 = arith.mulf %97, %98 : vector<8x64xf32>
    %cst_40 = arith.constant 4.471500e-02 : f32
    %100 = vector.broadcast %cst_40 : f32 to vector<8x64xf32>
    %101 = arith.mulf %100, %99 : vector<8x64xf32>
    %102 = arith.addf %97, %101 : vector<8x64xf32>
    %cst_41 = arith.constant 0.797884583 : f32
    %103 = vector.broadcast %cst_41 : f32 to vector<8x64xf32>
    %104 = arith.mulf %103, %102 : vector<8x64xf32>
    %105 = math.tanh %104 : vector<8x64xf32>
    %cst_42 = arith.constant 1.000000e+00 : f32
    %106 = vector.broadcast %cst_42 : f32 to vector<8x64xf32>
    %107 = arith.addf %106, %105 : vector<8x64xf32>
    %cst_43 = arith.constant 5.000000e-01 : f32
    %108 = vector.broadcast %cst_43 : f32 to vector<8x64xf32>
    %109 = arith.mulf %108, %107 : vector<8x64xf32>
    %110 = arith.mulf %97, %109 : vector<8x64xf32>
    %111 = arith.truncf %110 : vector<8x64xf32> to vector<8x64xbf16>
    %c0_44 = arith.constant 0 : index
    %c0_45 = arith.constant 0 : index
    %112 = vector.load %arg11[%c0_44, %c0_45] : memref<64x32xbf16, #tpu.memory_space<vmem>>, vector<64x32xbf16>
    %cst_46 = arith.constant dense<0.000000e+00> : vector<8x32xf32>
    %113 = tpu.matmul %111, %112, %cst_46 {dimension_numbers = #tpu.dot_dimension_numbers<[1], [0], [0], [1], [0, 0, 1, 1], [], []>} : vector<8x64xbf16>, vector<64x32xbf16>, vector<8x32xf32> -> vector<8x32xf32>
    %c0_47 = arith.constant 0 : index
    %c0_48 = arith.constant 0 : index
    %114 = vector.load %arg12[%c0_47, %c0_48] : memref<1x32xf32, #tpu.memory_space<vmem>>, vector<1x32xf32>
    %115 = vector.broadcast %114 : vector<1x32xf32> to vector<8x32xf32>
    %116 = arith.addf %113, %115 : vector<8x32xf32>
    %117 = arith.addf %91, %116 : vector<8x32xf32>
    %c0_49 = arith.constant 0 : index
    %c0_50 = arith.constant 0 : index
    %118 = vector.load %arg13[%c0_49, %c0_50] : memref<2x32xf32, #tpu.memory_space<vmem>>, vector<1x32xf32>
    %c1_51 = arith.constant 1 : index
    %c0_52 = arith.constant 0 : index
    %119 = vector.load %arg13[%c1_51, %c0_52] : memref<2x32xf32, #tpu.memory_space<vmem>>, vector<1x32xf32>
    %cst_53 = arith.constant dense<0.000000e+00> : vector<8xf32>
    %120 = vector.multi_reduction <add>, %117, %cst_53 [1] : vector<8x32xf32> to vector<8xf32>
    %121 = vector.shape_cast %120 : vector<8xf32> to vector<8x1xf32>
    %cst_54 = arith.constant 3.200000e+01 : f32
    %122 = vector.broadcast %cst_54 : f32 to vector<8x1xf32>
    %123 = arith.divf %121, %122 : vector<8x1xf32>
    %124 = vector.broadcast %123 : vector<8x1xf32> to vector<8x32xf32>
    %125 = arith.subf %117, %124 : vector<8x32xf32>
    %126 = arith.mulf %125, %125 : vector<8x32xf32>
    %cst_55 = arith.constant dense<0.000000e+00> : vector<8xf32>
    %127 = vector.multi_reduction <add>, %126, %cst_55 [1] : vector<8x32xf32> to vector<8xf32>
    %128 = vector.shape_cast %127 : vector<8xf32> to vector<8x1xf32>
    %cst_56 = arith.constant 3.200000e+01 : f32
    %129 = vector.broadcast %cst_56 : f32 to vector<8x1xf32>
    %130 = arith.divf %128, %129 : vector<8x1xf32>
    %131 = vector.broadcast %123 : vector<8x1xf32> to vector<8x32xf32>
    %132 = arith.subf %117, %131 : vector<8x32xf32>
    %cst_57 = arith.constant 9.99999996E-13 : f32
    %133 = vector.broadcast %cst_57 : f32 to vector<8x1xf32>
    %134 = arith.addf %130, %133 : vector<8x1xf32>
    %135 = math.rsqrt %134 : vector<8x1xf32>
    %136 = vector.broadcast %135 : vector<8x1xf32> to vector<8x32xf32>
    %137 = arith.mulf %132, %136 : vector<8x32xf32>
    %138 = vector.broadcast %118 : vector<1x32xf32> to vector<8x32xf32>
    %139 = arith.mulf %137, %138 : vector<8x32xf32>
    %140 = vector.broadcast %119 : vector<1x32xf32> to vector<8x32xf32>
    %141 = arith.addf %139, %140 : vector<8x32xf32>
    %142 = arith.truncf %141 : vector<8x32xf32> to vector<8x32xbf16>
    %c0_58 = arith.constant 0 : index
    %c0_59 = arith.constant 0 : index
    %c0_60 = arith.constant 0 : index
    %143 = vector.load %arg14[%c0_58, %c0_59, %c0_60] : memref<1x8x32xbf16, #tpu.memory_space<vmem>>, vector<1x8x32xbf16>
    %144 = vector.shape_cast %143 : vector<1x8x32xbf16> to vector<8x32xbf16>
    %145 = vector.shape_cast %142 : vector<8x32xbf16> to vector<1x8x32xbf16>
    tpu.vector_store %arg14[%c0_58, %c0_59, %c0_60], %145 {strides = array<i32>} : memref<1x8x32xbf16, #tpu.memory_space<vmem>>, vector<1x8x32xbf16>,
    return
  }
  func.func @transform_0(%arg0: i32) -> (i32, i32, i32) {
    %c0_i32 = arith.constant 0 : i32
    %c0_i32_0 = arith.constant 0 : i32
    %c0_i32_1 = arith.constant 0 : i32
    return %arg0, %c0_i32, %c0_i32_0 : i32, i32, i32
  }
  func.func @transform_1(%arg0: i32) -> (i32, i32, i32) {
    %c0_i32 = arith.constant 0 : i32
    %c0_i32_0 = arith.constant 0 : i32
    %c0_i32_1 = arith.constant 0 : i32
    return %arg0, %c0_i32, %c0_i32_0 : i32, i32, i32
  }
  func.func @transform_2(%arg0: i32) -> (i32, i32) {
    %c0_i32 = arith.constant 0 : i32
    %c0_i32_0 = arith.constant 0 : i32
    %c0_i32_1 = arith.constant 0 : i32
    return %c0_i32, %c0_i32_0 : i32, i32
  }
  func.func @transform_3(%arg0: i32) -> (i32, i32) {
    %c0_i32 = arith.constant 0 : i32
    %c0_i32_0 = arith.constant 0 : i32
    %c0_i32_1 = arith.constant 0 : i32
    return %c0_i32, %c0_i32_0 : i32, i32
  }
  func.func @transform_4(%arg0: i32) -> (i32, i32) {
    %c0_i32 = arith.constant 0 : i32
    %c0_i32_0 = arith.constant 0 : i32
    %c0_i32_1 = arith.constant 0 : i32
    return %c0_i32, %c0_i32_0 : i32, i32
  }
  func.func @transform_5(%arg0: i32) -> (i32, i32) {
    %c0_i32 = arith.constant 0 : i32
    %c0_i32_0 = arith.constant 0 : i32
    %c0_i32_1 = arith.constant 0 : i32
    return %c0_i32, %c0_i32_0 : i32, i32
  }
  func.func @transform_6(%arg0: i32) -> (i32, i32) {
    %c0_i32 = arith.constant 0 : i32
    %c0_i32_0 = arith.constant 0 : i32
    %c0_i32_1 = arith.constant 0 : i32
    return %c0_i32, %c0_i32_0 : i32, i32
  }
  func.func @transform_7(%arg0: i32) -> (i32, i32) {
    %c0_i32 = arith.constant 0 : i32
    %c0_i32_0 = arith.constant 0 : i32
    %c0_i32_1 = arith.constant 0 : i32
    return %c0_i32, %c0_i32_0 : i32, i32
  }
  func.func @transform_8(%arg0: i32) -> (i32, i32) {
    %c0_i32 = arith.constant 0 : i32
    %c0_i32_0 = arith.constant 0 : i32
    %c0_i32_1 = arith.constant 0 : i32
    return %c0_i32, %c0_i32_0 : i32, i32
  }
  func.func @transform_9(%arg0: i32) -> (i32, i32) {
    %c0_i32 = arith.constant 0 : i32
    %c0_i32_0 = arith.constant 0 : i32
    %c0_i32_1 = arith.constant 0 : i32
    return %c0_i32, %c0_i32_0 : i32, i32
  }
  func.func @transform_10(%arg0: i32) -> (i32, i32) {
    %c0_i32 = arith.constant 0 : i32
    %c0_i32_0 = arith.constant 0 : i32
    %c0_i32_1 = arith.constant 0 : i32
    return %c0_i32, %c0_i32_0 : i32, i32
  }
  func.func @transform_11(%arg0: i32) -> (i32, i32) {
    %c0_i32 = arith.constant 0 : i32
    %c0_i32_0 = arith.constant 0 : i32
    %c0_i32_1 = arith.constant 0 : i32
    return %c0_i32, %c0_i32_0 : i32, i32
  }
  func.func @transform_12(%arg0: i32) -> (i32, i32) {
    %c0_i32 = arith.constant 0 : i32
    %c0_i32_0 = arith.constant 0 : i32
    %c0_i32_1 = arith.constant 0 : i32
    return %c0_i32, %c0_i32_0 : i32, i32
  }
  func.func @transform_13(%arg0: i32) -> (i32, i32, i32) {
    %c0_i32 = arith.constant 0 : i32
    %c0_i32_0 = arith.constant 0 : i32
    %c0_i32_1 = arith.constant 0 : i32
    return %arg0, %c0_i32, %c0_i32_0 : i32, i32, i32
  }
}

module attributes {stable_mosaic.version = 11 : i64} {
  func.func @_heads_kernel(%arg0: i32, %arg1: memref<2x32xbf16, #tpu.memory_space<vmem>>, %arg2: memref<32x32xbf16, #tpu.memory_space<vmem>>, %arg3: memref<1x32xf32, #tpu.memory_space<vmem>>, %arg4: memref<32x32xbf16, #tpu.memory_space<vmem>>, %arg5: memref<1x32xf32, #tpu.memory_space<vmem>>, %arg6: memref<32x128xbf16, #tpu.memory_space<vmem>>, %arg7: memref<1x128xf32, #tpu.memory_space<vmem>>, %arg8: memref<2x32xf32, #tpu.memory_space<vmem>>, %arg9: memref<2x128xf32, #tpu.memory_space<vmem>>) attributes {dimension_semantics = [#tpu.dimension_semantics<arbitrary>], iteration_bounds = array<i64: 1>, scalar_prefetch = 0 : i64, scratch_operands = 0 : i64, tpu.core_type = #tpu.core_type<tc>, window_params = [{pipeline_mode = #tpu.pipeline_mode<synchronous>, transform_indices = @transform_0, window_bounds = array<i64: 2, 32>}, {pipeline_mode = #tpu.pipeline_mode<synchronous>, transform_indices = @transform_1, window_bounds = array<i64: 32, 32>}, {pipeline_mode = #tpu.pipeline_mode<synchronous>, transform_indices = @transform_2, window_bounds = array<i64: 1, 32>}, {pipeline_mode = #tpu.pipeline_mode<synchronous>, transform_indices = @transform_3, window_bounds = array<i64: 32, 32>}, {pipeline_mode = #tpu.pipeline_mode<synchronous>, transform_indices = @transform_4, window_bounds = array<i64: 1, 32>}, {pipeline_mode = #tpu.pipeline_mode<synchronous>, transform_indices = @transform_5, window_bounds = array<i64: 32, 128>}, {pipeline_mode = #tpu.pipeline_mode<synchronous>, transform_indices = @transform_6, window_bounds = array<i64: 1, 128>}, {pipeline_mode = #tpu.pipeline_mode<synchronous>, transform_indices = @transform_7, window_bounds = array<i64: 2, 32>}, {pipeline_mode = #tpu.pipeline_mode<synchronous>, transform_indices = @transform_8, window_bounds = array<i64: 2, 128>}]} {
    %c0 = arith.constant 0 : index
    %c0_0 = arith.constant 0 : index
    %0 = vector.load %arg1[%c0, %c0_0] : memref<2x32xbf16, #tpu.memory_space<vmem>>, vector<2x32xbf16>
    %1 = arith.extf %0 : vector<2x32xbf16> to vector<2x32xf32>
    %2 = arith.truncf %1 : vector<2x32xf32> to vector<2x32xbf16>
    %c0_1 = arith.constant 0 : index
    %c0_2 = arith.constant 0 : index
    %3 = vector.load %arg2[%c0_1, %c0_2] : memref<32x32xbf16, #tpu.memory_space<vmem>>, vector<32x32xbf16>
    %cst = arith.constant dense<0.000000e+00> : vector<2x32xf32>
    %4 = tpu.matmul %2, %3, %cst {dimension_numbers = #tpu.dot_dimension_numbers<[1], [0], [0], [1], [0, 0, 1, 1], [], []>} : vector<2x32xbf16>, vector<32x32xbf16>, vector<2x32xf32> -> vector<2x32xf32>
    %c0_3 = arith.constant 0 : index
    %c0_4 = arith.constant 0 : index
    %5 = vector.load %arg3[%c0_3, %c0_4] : memref<1x32xf32, #tpu.memory_space<vmem>>, vector<1x32xf32>
    %6 = vector.broadcast %5 : vector<1x32xf32> to vector<2x32xf32>
    %7 = arith.addf %4, %6 : vector<2x32xf32>
    %cst_5 = arith.constant 0.000000e+00 : f32
    %8 = vector.broadcast %cst_5 : f32 to vector<2x32xf32>
    %9 = arith.maximumf %7, %8 : vector<2x32xf32>
    %10 = arith.truncf %9 : vector<2x32xf32> to vector<2x32xbf16>
    %c0_6 = arith.constant 0 : index
    %c0_7 = arith.constant 0 : index
    %11 = vector.load %arg4[%c0_6, %c0_7] : memref<32x32xbf16, #tpu.memory_space<vmem>>, vector<32x32xbf16>
    %cst_8 = arith.constant dense<0.000000e+00> : vector<2x32xf32>
    %12 = tpu.matmul %10, %11, %cst_8 {dimension_numbers = #tpu.dot_dimension_numbers<[1], [0], [0], [1], [0, 0, 1, 1], [], []>} : vector<2x32xbf16>, vector<32x32xbf16>, vector<2x32xf32> -> vector<2x32xf32>
    %c0_9 = arith.constant 0 : index
    %c0_10 = arith.constant 0 : index
    %13 = vector.load %arg5[%c0_9, %c0_10] : memref<1x32xf32, #tpu.memory_space<vmem>>, vector<1x32xf32>
    %14 = vector.broadcast %13 : vector<1x32xf32> to vector<2x32xf32>
    %15 = arith.addf %12, %14 : vector<2x32xf32>
    %c0_11 = arith.constant 0 : index
    %c0_12 = arith.constant 0 : index
    %16 = vector.load %arg8[%c0_11, %c0_12] : memref<2x32xf32, #tpu.memory_space<vmem>>, vector<2x32xf32>
    tpu.vector_store %arg8[%c0_11, %c0_12], %15 {strides = array<i32>} : memref<2x32xf32, #tpu.memory_space<vmem>>, vector<2x32xf32>,
    %c0_13 = arith.constant 0 : index
    %c0_14 = arith.constant 0 : index
    %17 = vector.load %arg6[%c0_13, %c0_14] : memref<32x128xbf16, #tpu.memory_space<vmem>>, vector<32x128xbf16>
    %cst_15 = arith.constant dense<0.000000e+00> : vector<2x128xf32>
    %18 = tpu.matmul %2, %17, %cst_15 {dimension_numbers = #tpu.dot_dimension_numbers<[1], [0], [0], [1], [0, 0, 1, 1], [], []>} : vector<2x32xbf16>, vector<32x128xbf16>, vector<2x128xf32> -> vector<2x128xf32>
    %c0_16 = arith.constant 0 : index
    %c0_17 = arith.constant 0 : index
    %19 = vector.load %arg7[%c0_16, %c0_17] : memref<1x128xf32, #tpu.memory_space<vmem>>, vector<1x128xf32>
    %20 = vector.broadcast %19 : vector<1x128xf32> to vector<2x128xf32>
    %21 = arith.addf %18, %20 : vector<2x128xf32>
    %c0_18 = arith.constant 0 : index
    %c0_19 = arith.constant 0 : index
    %22 = vector.load %arg9[%c0_18, %c0_19] : memref<2x128xf32, #tpu.memory_space<vmem>>, vector<2x128xf32>
    tpu.vector_store %arg9[%c0_18, %c0_19], %21 {strides = array<i32>} : memref<2x128xf32, #tpu.memory_space<vmem>>, vector<2x128xf32>,
    return
  }
  func.func @transform_0(%arg0: i32) -> (i32, i32) {
    %c0_i32 = arith.constant 0 : i32
    %c0_i32_0 = arith.constant 0 : i32
    %c0_i32_1 = arith.constant 0 : i32
    return %c0_i32, %c0_i32_0 : i32, i32
  }
  func.func @transform_1(%arg0: i32) -> (i32, i32) {
    %c0_i32 = arith.constant 0 : i32
    %c0_i32_0 = arith.constant 0 : i32
    %c0_i32_1 = arith.constant 0 : i32
    return %c0_i32, %c0_i32_0 : i32, i32
  }
  func.func @transform_2(%arg0: i32) -> (i32, i32) {
    %c0_i32 = arith.constant 0 : i32
    %c0_i32_0 = arith.constant 0 : i32
    %c0_i32_1 = arith.constant 0 : i32
    return %c0_i32, %c0_i32_0 : i32, i32
  }
  func.func @transform_3(%arg0: i32) -> (i32, i32) {
    %c0_i32 = arith.constant 0 : i32
    %c0_i32_0 = arith.constant 0 : i32
    %c0_i32_1 = arith.constant 0 : i32
    return %c0_i32, %c0_i32_0 : i32, i32
  }
  func.func @transform_4(%arg0: i32) -> (i32, i32) {
    %c0_i32 = arith.constant 0 : i32
    %c0_i32_0 = arith.constant 0 : i32
    %c0_i32_1 = arith.constant 0 : i32
    return %c0_i32, %c0_i32_0 : i32, i32
  }
  func.func @transform_5(%arg0: i32) -> (i32, i32) {
    %c0_i32 = arith.constant 0 : i32
    %c0_i32_0 = arith.constant 0 : i32
    %c0_i32_1 = arith.constant 0 : i32
    return %c0_i32, %c0_i32_0 : i32, i32
  }
  func.func @transform_6(%arg0: i32) -> (i32, i32) {
    %c0_i32 = arith.constant 0 : i32
    %c0_i32_0 = arith.constant 0 : i32
    %c0_i32_1 = arith.constant 0 : i32
    return %c0_i32, %c0_i32_0 : i32, i32
  }
  func.func @transform_7(%arg0: i32) -> (i32, i32) {
    %c0_i32 = arith.constant 0 : i32
    %c0_i32_0 = arith.constant 0 : i32
    %c0_i32_1 = arith.constant 0 : i32
    return %c0_i32, %c0_i32_0 : i32, i32
  }
  func.func @transform_8(%arg0: i32) -> (i32, i32) {
    %c0_i32 = arith.constant 0 : i32
    %c0_i32_0 = arith.constant 0 : i32
    %c0_i32_1 = arith.constant 0 : i32
    return %c0_i32, %c0_i32_0 : i32, i32
  }
}

</mosaic_0001>

<bundles_post_ra>
// kernel: lacium_flower_forward.5
= control target key start
LH: loop header
LB: loop body
LE: loop exit
PB: predicated region body
PF: predicated region fallthrough
CT: control target
= control target key end

     0   :  { %v328_v1 = vmov 0.0   ;;  %vm329_vm0 = vmmov 0   ;;  %s424_s0 = inlined_call_operand.vmem [shape: bf16[2,32], index: 0, kind: input, shape index: {}]   ;;  %s425_s1 = inlined_call_operand.vmem [shape: bf16[32,32], index: 1, kind: input, shape index: {}]   ;;  %s426_s2 = inlined_call_operand.vmem [shape: f32[1,32], index: 2, kind: input, shape index: {}]   ;;  %s427_s3 = inlined_call_operand.vmem [shape: bf16[32,32], index: 3, kind: input, shape index: {}]   ;;  %s428_s4 = inlined_call_operand.vmem [shape: f32[1,32], index: 4, kind: input, shape index: {}]   ;;  %s429_s5 = inlined_call_operand.vmem [shape: bf16[32,128], index: 5, kind: input, shape index: {}]   ;;  %s430_s6 = inlined_call_operand.vmem [shape: f32[1,128], index: 6, kind: input, shape index: {}]   ;;  %s431_s7 = inlined_call_operand.hbm [shape: f32[2,32], index: 7, kind: output, shape index: {0}]   ;;  %s432_s8 = inlined_call_operand.vmem [shape: f32[2,128], index: 8, kind: output, shape index: {1}]  }
   0x1   :  { %v298_v0 = vld [vmem:[%s425_s1] sm:$0xff]   ;;  %271 = vmatprep.subr.bf16.mxu0 %v328_v1  ;;  %279 = vmatprep.subr.bf16.mxu1 %v328_v1  ;;  %v299_v2 = vld [vmem:[%s425_s1 + $0x8] sm:$0xff]  }
   0x2   :  { %272 = vmatpush3.bf16.msra.mxu0 %v298_v0  ;;  %275 = vmatprep.mubr.msk.bf16.mxu0 %vm329_vm0, %v328_v1 }
   0x3   :  { %273 = vmatprep.subr.bf16.mxu0 %v328_v1  ;;  %283 = vmatprep.mubr.msk.bf16.mxu1 %vm329_vm0, %v328_v1 }
   0x4   :  { %14 = vsyncpa [#allocation3], 0  ;;  %v30_v3 = vld [vmem:[%s424_s0] sm:$0x1]  ;;  %vm54_vm1 = vcmask 261120   ;;  %v302_v6 = vld [vmem:[%s429_s5 + $0x8] sm:$0xff]  }
   0x5   :  { %v300_v4 = vld [vmem:[%s429_s5] sm:$0xff]   ;;  %v303_v7 = vld [vmem:[%s427_s3 + $0x8] sm:$0xff]   ;;  %s330_s22 = smov [#allocation2]   ;;  %vm166_vm2 = vcmask 254976  }
   0x6   :  { %274 = vmatpush3.bf16.msra.mxu0 %v299_v2  ;;  %v301_v5 = vld [vmem:[%s427_s3] sm:$0xff]   ;;  %s238_s23 = sshll.u32 %s330_s22, 4  ;;  %s239_s23 = int_to_ptr.vmem [resolvable:$true] %s238_s23 }
   0x7   :  { %287 = vmatprep.subr.bf16.mxu0 %v328_v1  ;;  %280 = vmatpush3.bf16.msra.mxu1 %v301_v5  ;;  %v250_v8 = vld [vmem:[%s426_s2] ss:$0 sm:$0xff]  ;;  %p309_p1 = scmp.lt.s32.totalorder %s239_s23, %s239_s23 }
   0x8   :  { %281 = vmatprep.subr.bf16.mxu1 %v328_v1  ;;  %v258_v16 = vld [vmem:[%s430_s6] ss:$0 sm:$0xff]  ;;  %s304_s6 = scalar_lea.vmem %s239_s23, 32 }
   0x9   :  { %276 = vmatmul.mubr.msk.bf16.vlgmr.msra.gmra.mrb[0].mxu0 %vm54_vm1, %v30_v3  ;;  %v254_v22 = vld [vmem:[%s428_s4] ss:$0 sm:$0xff]  ;;  %p305_p0 = scmp.ne.s32.totalorder %s239_s23, %s304_s6  ;;  %p310_p2 = scmp.lt.s32.totalorder %s304_s6, %s304_s6 }
   0xa   :  { %288 = vmatpush3.bf16.msra.mxu0 %v300_v4  ;;  %291 = vmatprep.mubr.msk.bf16.mxu0 %vm329_vm0, %v328_v1 }
   0xb   :  { %289 = vmatprep.subr.bf16.mxu0 %v328_v1  ;;  %282 = vmatpush3.bf16.msra.mxu1 %v303_v7  ;;  %p311_p3 = por %p310_p2, %p309_p1 }
   0xd   :  { %p312_p4 = pnand %p311_p3, %p305_p0 }
   0xe   :  { %290 = vmatpush3.bf16.msra.mxu0 %v302_v6 }
  0x11   :  { %292 = vmatmul.mubr.msk.bf16.vlgmr.msra.gmra.mrb[4].mxu0 %vm54_vm1, %v30_v3 }
  0xdc   :  { %v92_v9 = vpop.f32.mrb[0].mxu0 }
  0xdd   :  { %v93_v10 = vadd.f32 %v250_v8, %v92_v9  ;;  %v277_v11 = vpop.f32.mrb[1].mxu0 }
  0xde   :  { %v95_v12 = vpop.f32.mrb[2].mxu0 }
  0xdf   :  { %v98_v13 = vmax.f32 %v93_v10, 0.0  ;;  %v278_v14 = vpop.f32.mrb[3].mxu0 }
  0xe1   :  { %v99_v15 = vpack.c.bf16 %v98_v13, %v98_v13 }
  0xe3   :  { %284 = vmatmul.mubr.msk.bf16.vlgmr.msra.gmra.mrb[0].mxu1 %vm54_vm1, %v99_v15 }
  0xe4   :  { %v225_v17 = vpop.f32.mrb[4].mxu0 }
  0xe5   :  { %v226_v18 = vadd.f32 %v258_v16, %v225_v17  ;;  %v293_v19 = vpop.f32.mrb[5].mxu0 }
  0xe6   :  { %v228_v20 = vpop.f32.mrb[6].mxu0 }
  0xe7   :  { %231 = vst [vmem:[%s432_s8] sm:$0x3] %v226_v18  ;;  %v294_v21 = vpop.f32.mrb[7].mxu0 }
 0x1b6   :  { %v160_v23 = vpop.f32.mrb[0].mxu1 }
 0x1b7   :  { %v161_v24 = vadd.f32 %v254_v22, %v160_v23  ;;  %v285_v25 = vpop.f32.mrb[1].mxu1 }
 0x1b8   :  { %v163_v26 = vpop.f32.mrb[2].mxu1 }
 0x1b9   :  { %v286_v27 = vpop.f32.mrb[3].mxu1  ;;  %167 = vst.msk [vmem:[#allocation2] sm:$0x3] %vm166_vm2, %v161_v24 }
 0x1ba   :  { %315 = shalt.err (!%p312_p4)
}
 0x1bb   :  { %s316_s4 = scalar_lea.hbm %s431_s7, 32 }
 0x1bc   :  { %p317_p5 = scmp.ne.s32.totalorder %s431_s7, %s316_s4  ;;  %p320_p6 = scmp.lt.u32.totalorder %s316_s4, %s431_s7 }
 0x1be   :  { %p322_p7 = pnand %p320_p6, %p317_p5 }
 0x1c0   :  { %325 = shalt.err (!%p322_p7)
}
 0x1c1   :  { %241 = dma.vmem_to_hbm [thread:$0]  %s239_s23, 32, %s431_s7, [#allocation3]  }
 0x1c2   :  { %326 = dma.done.wait [#allocation3], 32  }
 0x1c3   :  { %327 = vsyncadd [#allocation3], 4294967264 }
 0x1c4   :  { %249 = vsyncpa [#allocation3], 1 }

// kernel: lacium_flower_forward.4
= control target key start
LH: loop header
LB: loop body
LE: loop exit
PB: predicated region body
PF: predicated region fallthrough
CT: control target
= control target key end

     0   :  { %s2313_s24 = smov 0   ;;  %s2584_s0 = inlined_call_operand.vmem [shape: bf16[2,8,32], index: 0, kind: input, shape index: {}]   ;;  %s2585_s1 = inlined_call_operand.vmem [shape: f32[2,1,8], index: 1, kind: input, shape index: {}]   ;;  %s2586_s2 = inlined_call_operand.vmem [shape: f32[2,32], index: 2, kind: input, shape index: {}]   ;;  %s2587_s3 = inlined_call_operand.vmem [shape: bf16[32,96], index: 3, kind: input, shape index: {}]   ;;  %s2588_s4 = inlined_call_operand.vmem [shape: f32[1,96], index: 4, kind: input, shape index: {}]   ;;  %s2589_s5 = inlined_call_operand.vmem [shape: bf16[32,32], index: 5, kind: input, shape index: {}]   ;;  %s2590_s6 = inlined_call_operand.vmem [shape: f32[1,32], index: 6, kind: input, shape index: {}]   ;;  %s2591_s7 = inlined_call_operand.vmem [shape: f32[2,32], index: 7, kind: input, shape index: {}]   ;;  %s2592_s8 = inlined_call_operand.vmem [shape: bf16[32,64], index: 8, kind: input, shape index: {}]   ;;  %s2593_s9 = inlined_call_operand.vmem [shape: f32[1,64], index: 9, kind: input, shape index: {}]   ;;  %s2594_s10 = inlined_call_operand.vmem [shape: bf16[64,32], index: 10, kind: input, shape index: {}]   ;;  %s2595_s11 = inlined_call_operand.vmem [shape: f32[1,32], index: 11, kind: input, shape index: {}]   ;;  %s2596_s12 = inlined_call_operand.vmem [shape: f32[2,32], index: 12, kind: input, shape index: {}]   ;;  %s2597_s13 = inlined_call_operand.vmem [shape: bf16[2,8,32], index: 13, kind: output, shape index: {}]  }
   0x1 LB: > { %s2009_s25 = sadd.s32 4294967295, %s2229_s24   ;;  %p2013_p0 = scmp.ge.s32.totalorder %s2229_s24, 1  ;;  %s2229_s24 = sphi %s2313_s24, %s23_s24  }
   0x2   : > { %p394_p1 = scmp.lt.s32.totalorder %s2229_s24, 3 }
   0x4   : > { %p395_p2 = pnand %p2013_p0, %p394_p1 }
   0x5   : > { %v2191_v0 = vld [vmem:[%s2587_s3] sm:$0xff] (!%p395_p2)   ;;  %v2231_v1 = vmov (!%p395_p2), 0.0   ;;  %v2192_v2 = vld [vmem:[%s2587_s3 + $0x8] sm:$0xff] (!%p395_p2)   ;;  %vm2232_vm0 = vmmov (!%p395_p2), 0   ;;  %p439_p3 = scmp.lt.s32.totalorder (!%p395_p2), %s2009_s25, 1  ;;  %vm476_vm1 = vcmask (!%p395_p2), 261120   ;;  %v535_v15 = vlaneseq (!%p395_p2) }
   0x6   : > { %398 = sbr.rel (%p395_p2) target bundleno = 2728 (0xaa8), region = 72  ;;  %2091 = vmatprep.subr.bf16.mxu0 (!%p395_p2), %v2231_v1  ;;  %2104 = vmatprep.subr.mxu1 (!%p395_p2), %v2231_v1  ;;  %v2016_v4 = vld [vmem:[%s2588_s4] ss:$0 sm:$0xff] (!%p395_p2)  ;;  %s2233_s18 = smov (!%p395_p2), 104   ;;  %v2237_v13 = vmov (!%p395_p2), 1983009808  }
   0x7   : > { %2092 = vmatpush3.bf16.msra.mxu0 (!%p395_p2), %v2191_v0  ;;  %2095 = vmatprep.mubr.msk.bf16.mxu0 (!%p395_p2), %vm2232_vm0, %v2231_v1  ;;  %s2234_s19 = smov (!%p395_p2), 120   ;;  %s2235_s20 = smov (!%p395_p2), 96   ;;  %v533_v14 = vunpack.c.l.s4 (!%p395_p2), %v2237_v13  ;;  %v536_v17 = vshrl.u32 (!%p395_p2), %v535_v15, 7  ;;  %v2238_v18 = vmov (!%p395_p2), 1934713408   ;;  %vm969_vm2 = vcmask (!%p395_p2), 64512  }
   0x8   : > { %2093 = vmatprep.subr.bf16.mxu0 (!%p395_p2), %v2231_v1  ;;  %2106 = vmatprep.mubr.msk.f32.mxu1 (!%p395_p2), %vm2232_vm0, %v2231_v1  ;;  %s2236_s21 = smov (!%p395_p2), 112   ;;  %v565_v19 = vunpack.c.l.s4 (!%p395_p2), %v2238_v18  ;;  %s2239_s27 = smov (!%p395_p2), 64   ;;  %vm1329_vm3 = vcmask (!%p395_p2), 1043456   ;;  %vm1660_vm4 = vcmask (!%p395_p2), 130048   ;;  %vm1662_vm5 = vcmask (!%p395_p2), 195584  }
   0x9   : > { %v534_v16 = vunpack.c.0.s8 (!%p395_p2), %v533_v14  ;;  %s2241_s16 = smov (!%p395_p2), 8   ;;  %s2242_s17 = smov (!%p395_p2), 24   ;;  %vm1874_vm6 = vcmask (!%p395_p2), 523264   ;;  %vm1945_vm7 = vcmask (!%p395_p2), 257024  }
   0xa   : > { %v566_v25 = vunpack.c.0.s8 (!%p395_p2), %v565_v19 }
   0xb   : > { %2094 = vmatpush3.bf16.msra.mxu0 (!%p395_p2), %v2192_v2  ;;  %v2371_v22 = vsub.s32 (!%p395_p2), %v534_v16, %v536_v17 }
   0xc   : > { %2099 = vmatprep.subr.mxu0 (!%p395_p2), %v2231_v1  ;;  %v2381_v30 = vsub.s32 (!%p395_p2), %v566_v25, %v536_v17 }
   0xd   : > { %s2599_s25 = smov (!%p439_p3, %s2009_s25), 1 }
   0xe   : > { %s2014_s30 = sshll.u32 %s2599_s25, 2  ;;  %s445_s26 = scalar_lea.vmem %s2585_s1, %s2599_s25 }
   0xf   : > { %s442_s2 = scalar_lea.vmem %s2584_s0, %s2014_s30 }
  0x10   : > { %v2343_v3 = vld [vmem:[%s442_s2] sm:$0xf]  ;;  %s2240_s2 = smov 16  }
  0x11   : > { %2096 = vmatmul.mubr.msk.bf16.vlgmr.msra.gmra.mrb[0].mxu0 %vm476_vm1, %v2343_v3 }
  0x12   : > { %2101 = vmatprep.mubr.msk.f32.mxu0 %vm2232_vm0, %v2231_v1 }
  0xe4   : > { %v514_v5 = vpop.f32.mrb[0].mxu0 }
  0xe5   : > { %v2352_v6 = vadd.f32 %v2016_v4, %v514_v5  ;;  %v2097_v7 = vpop.f32.mrb[1].mxu0 }
  0xe6   : > { %v517_v8 = vpop.f32.mrb[2].mxu0 }
  0xe7   : > { %527 = vrot.lane.b32.xlu1 %v2352_v6, %s2233_s18  ;;  %521 = vrot.lane.b32.xlu0 %v2352_v6, %s2234_s19  ;;  %v2098_v9 = vpop.f32.mrb[3].mxu0 }
  0xeb   : > { %666 = vrot.lane.b32.xlu1 %v2352_v6, %s2235_s20  ;;  %524 = vrot.lane.b32.xlu0 %v2352_v6, %s2236_s21 }
 0x159   : > { %v2358_v10 = vpop.permute.xlu0 %521  ;;  %v2361_v11 = vpop.permute.xlu1 %527 }
 0x15a   : > { %668 = vrot.lane.b32.xlu0 %v2358_v10, %s2235_s20  ;;  %v546_v23 = vcombine.low %v2358_v10, %v2361_v11  ;;  %v547_v24 = vcombine.high %v2358_v10, %v2361_v11 }
 0x15c   : > { %v554_v28 = vrot.slane %v546_v23, %v2371_v22  ;;  %v561_v29 = vrot.slane %v547_v24, %v2371_v22 }
 0x15d   : > { %v2363_v12 = vpop.permute.xlu0 %524  ;;  %v667_v31 = vpop.permute.xlu1 %666 }
 0x15e   : > { %672 = vrot.lane.b32.xlu0 %v2361_v11, %s2235_s20  ;;  %670 = vrot.lane.b32.xlu1 %v2363_v12, %s2235_s20  ;;  %v530_v20 = vcombine.low %v2352_v6, %v2363_v12  ;;  %v531_v21 = vcombine.high %v2352_v6, %v2363_v12 }
 0x160   : > { %v538_v26 = vrot.slane %v530_v20, %v2371_v22  ;;  %v545_v27 = vrot.slane %v531_v21, %v2371_v22 }
 0x162   : > { %v562_v32 = vcombine.low %v538_v26, %v554_v28  ;;  %v563_v33 = vcombine.high %v538_v26, %v554_v28  ;;  %v578_v34 = vcombine.low %v545_v27, %v561_v29  ;;  %v579_v35 = vcombine.high %v545_v27, %v561_v29 }
 0x164   : > { %v570_v37 = vrot.slane %v562_v32, %v2381_v30  ;;  %v577_v38 = vrot.slane %v563_v33, %v2381_v30  ;;  %v586_v39 = vrot.slane %v578_v34, %v2381_v30  ;;  %v593_v40 = vrot.slane %v579_v35, %v2381_v30 }
 0x166   : > { %v598_v51 = vcombine.low %v570_v37, %v577_v38  ;;  %v2020_v52 = vcombine.high %v570_v37, %v577_v38  ;;  %v614_v53 = vcombine.low %v586_v39, %v593_v40  ;;  %v2021_v54 = vcombine.high %v586_v39, %v593_v40 }
 0x168   : > { %v605_v63 = vrot.slane %v598_v51, %v2371_v22  ;;  %v613_v0 = vrot.slane %v2020_v52, %v2371_v22  ;;  %v621_v2 = vrot.slane %v614_v53, %v2371_v22  ;;  %v629_v4 = vrot.slane %v2021_v54, %v2371_v22 }
 0x16a   : > { %v630_v17 = vcombine.low %v605_v63, %v613_v0  ;;  %v646_v18 = vcombine.low %v621_v2, %v629_v4  ;;  %v631_v26 = vcombine.high %v605_v63, %v613_v0  ;;  %v647_v29 = vcombine.high %v621_v2, %v629_v4 }
 0x16c   : > { %v638_v27 = vrot.slane %v630_v17, %v2381_v30  ;;  %v654_v28 = vrot.slane %v646_v18, %v2381_v30  ;;  %v645_v35 = vrot.slane %v631_v26, %v2381_v30  ;;  %v661_v38 = vrot.slane %v647_v29, %v2381_v30 }
 0x16e   : > { %v663_v37 = vcombine.high %v638_v27, %v654_v28 }
 0x1cc   : > { %v669_v36 = vpop.permute.xlu0 %668 }
 0x1d0   : > { %v671_v41 = vpop.permute.xlu1 %670  ;;  %v673_v42 = vpop.permute.xlu0 %672 }
 0x1d1   : > { %v678_v43 = vcombine.low %v667_v31, %v671_v41  ;;  %v679_v44 = vcombine.high %v667_v31, %v671_v41  ;;  %v694_v45 = vcombine.low %v669_v36, %v673_v42  ;;  %v695_v46 = vcombine.high %v669_v36, %v673_v42 }
 0x1d2   : > { %v662_v36 = vcombine.low %v638_v27, %v654_v28  ;;  %v664_v41 = vcombine.low %v645_v35, %v661_v38  ;;  %v665_v42 = vcombine.high %v645_v35, %v661_v38 }
 0x1d3   : > { %v686_v47 = vrot.slane %v678_v43, %v2371_v22  ;;  %v693_v48 = vrot.slane %v679_v44, %v2371_v22  ;;  %v702_v49 = vrot.slane %v694_v45, %v2371_v22  ;;  %v709_v50 = vrot.slane %v695_v46, %v2371_v22  ;;  %v2026_v43 = vld [vmem:[%s445_s26] ss:$0 sm:$0xff] }
 0x1d5   : > { %v710_v55 = vcombine.low %v686_v47, %v702_v49  ;;  %v711_v56 = vcombine.high %v686_v47, %v702_v49  ;;  %v726_v57 = vcombine.low %v693_v48, %v709_v50  ;;  %v727_v58 = vcombine.high %v693_v48, %v709_v50 }
 0x1d7   : > { %v718_v59 = vrot.slane %v710_v55, %v2381_v30  ;;  %v725_v60 = vrot.slane %v711_v56, %v2381_v30  ;;  %v734_v61 = vrot.slane %v726_v57, %v2381_v30  ;;  %v741_v62 = vrot.slane %v727_v58, %v2381_v30 }
 0x1d9   : > { %v746_v5 = vcombine.low %v718_v59, %v725_v60  ;;  %v2022_v7 = vcombine.high %v718_v59, %v725_v60  ;;  %v762_v8 = vcombine.low %v734_v61, %v741_v62  ;;  %v2023_v9 = vcombine.high %v734_v61, %v741_v62 }
 0x1db   : > { %v753_v13 = vrot.slane %v746_v5, %v2371_v22  ;;  %v761_v14 = vrot.slane %v2022_v7, %v2371_v22  ;;  %v769_v15 = vrot.slane %v762_v8, %v2371_v22  ;;  %v777_v16 = vrot.slane %v2023_v9, %v2371_v22 }
 0x1dd   : > { %v778_v19 = vcombine.low %v753_v13, %v761_v14  ;;  %v779_v20 = vcombine.high %v753_v13, %v761_v14  ;;  %v794_v21 = vcombine.low %v769_v15, %v777_v16  ;;  %v795_v23 = vcombine.high %v769_v15, %v777_v16 }
 0x1df   : > { %v786_v24 = vrot.slane %v778_v19, %v2381_v30  ;;  %v802_v25 = vrot.slane %v794_v21, %v2381_v30  ;;  %v793_v33 = vrot.slane %v779_v20, %v2381_v30  ;;  %v809_v34 = vrot.slane %v795_v23, %v2381_v30 }
 0x1e1   : > { %v810_v31 = vcombine.low %v786_v24, %v802_v25  ;;  %v811_v32 = vcombine.high %v786_v24, %v802_v25  ;;  %v812_v39 = vcombine.low %v793_v33, %v809_v34  ;;  %v813_v40 = vcombine.high %v793_v33, %v809_v34 }
 0x1e3   : > { %2100 = vmatpush3.xpose.msk.msra.mxu0 %vm969_vm2, %v810_v31  ;;  %2105 = vmatpush3.xpose.msk.msra.mxu1 %vm969_vm2, %v811_v32 }
 0x1e4   : > { %2109 = vmatprep.subr.mxu1 %v2231_v1  ;;  %2114 = vmatprep.subr.mxu0 %v2231_v1 }
 0x1e6   : > { %2102 = vmatmul.mubr.msk.f32.vlgmr.msra.gmra.mrb[4].mxu0 %vm969_vm2, %v662_v36  ;;  %2107 = vmatmul.mubr.msk.f32.vlgmr.msra.gmra.mrb[0].mxu1 %vm969_vm2, %v663_v37 }
 0x1e7   : > { %2110 = vmatpush3.xpose.msk.msra.mxu1 %vm969_vm2, %v812_v39  ;;  %2115 = vmatpush3.xpose.msk.msra.mxu0 %vm969_vm2, %v813_v40 }
 0x1e8   : > { %2111 = vmatprep.mubr.msk.f32.mxu1 %vm2232_vm0, %v2231_v1  ;;  %2116 = vmatprep.mubr.msk.f32.mxu0 %vm2232_vm0, %v2231_v1 }
 0x1e9   : > { %2119 = vmatprep.subr.bf16.mxu1 %v2231_v1  ;;  %2125 = vmatprep.subr.bf16.mxu0 %v2231_v1 }
 0x1ea   : > { %2112 = vmatmul.mubr.msk.f32.vlgmr.msra.gmra.mrb[2].mxu1 %vm969_vm2, %v664_v41  ;;  %2117 = vmatmul.mubr.msk.f32.vlgmr.msra.gmra.mrb[6].mxu0 %vm969_vm2, %v665_v42 }
 0x1eb   : > { %2121 = vmatprep.mubr.msk.bf16.mxu1 %vm2232_vm0, %v2231_v1  ;;  %2127 = vmatprep.mubr.msk.bf16.mxu0 %vm2232_vm0, %v2231_v1 }
 0x2b9   : > { %v1042_v44 = vpop.f32.mrb[4].mxu0  ;;  %v1118_v45 = vpop.f32.mrb[0].mxu1 }
 0x2ba   : > { %v1043_v46 = vadd.f32 %v2026_v43, %v1042_v44  ;;  %v1119_v47 = vadd.f32 %v2026_v43, %v1118_v45  ;;  %v2103_v48 = vpop.f32.mrb[5].mxu0  ;;  %v2108_v49 = vpop.f32.mrb[1].mxu1 }
 0x2bc   : > { %v1277_v50 = vsel %vm969_vm2, %v1119_v47, -inf  ;;  %v1274_v51 = vsel %vm969_vm2, %v1043_v46, -inf }
 0x2bd   : > { %1278 = vmax.xlane.f32.xlu0 %v1277_v50  ;;  %v1194_v52 = vpop.f32.mrb[2].mxu1  ;;  %1275 = vmax.xlane.f32.xlu1 %v1274_v51  ;;  %v1270_v53 = vpop.f32.mrb[6].mxu0 }
 0x2be   : > { %v1195_v54 = vadd.f32 %v2026_v43, %v1194_v52  ;;  %v1271_v55 = vadd.f32 %v2026_v43, %v1270_v53  ;;  %v2113_v56 = vpop.f32.mrb[3].mxu1  ;;  %v2118_v57 = vpop.f32.mrb[7].mxu0 }
 0x2c0   : > { %v1280_v58 = vsel %vm969_vm2, %v1195_v54, -inf  ;;  %v1283_v59 = vsel %vm969_vm2, %v1271_v55, -inf }
 0x2c1   : > { %1281 = vmax.xlane.f32.xlu0 %v1280_v58  ;;  %1284 = vmax.xlane.f32.xlu1 %v1283_v59 }
 0x2d2   : > { %816 = vrot.lane.b32.xlu1 %v2358_v10, %s2239_s27 }
 0x2d7   : > { %814 = vrot.lane.b32.xlu0 %v2352_v6, %s2239_s27 }
 0x34a   : > { %v1279_v60 = vpop.xlane.xlu0 %1278  ;;  %v1276_v61 = vpop.xlane.xlu1 %1275 }
 0x34b   : > { %v1287_v62 = vsub.f32 %v1119_v47, %v1279_v60  ;;  %v1286_v63 = vsub.f32 %v1043_v46, %v1276_v61 }
 0x34d   : > { %v1292_v0 = vmul.f32 1.442695, %v1287_v62  ;;  %v1290_v2 = vmul.f32 1.442695, %v1286_v63 }
 0x34e   : > { %v1282_v6 = vpop.xlane.xlu0 %1281  ;;  %v1285_v8 = vpop.xlane.xlu1 %1284 }
 0x34f   : > { %2201 = vpow2.f32 %v1292_v0  ;;  %v1288_v9 = vsub.f32 %v1195_v54, %v1282_v6  ;;  %v1289_v13 = vsub.f32 %v1271_v55, %v1285_v8 }
 0x350   : > { %2203 = vpow2.f32 %v1290_v2 }
 0x351   : > { %v1294_v14 = vmul.f32 1.442695, %v1288_v9  ;;  %v1296_v15 = vmul.f32 1.442695, %v1289_v13 }
 0x352   : > { %v815_v19 = vpop.permute.xlu0 %814 }
 0x353   : > { %2205 = vpow2.f32 %v1294_v14 }
 0x354   : > { %2207 = vpow2.f32 %v1296_v15 }
 0x359   : > { %v2441_v4 = vpop.eup %2201 }
 0x35a   : > { %v2443_v5 = vpop.eup %2203  ;;  %v1301_v7 = vsel %vm969_vm2, %v2441_v4, 0.0 }
 0x35b   : > { %v1298_v10 = vsel %vm969_vm2, %v2443_v5, 0.0  ;;  %1302 = vadd.xlane.f32.xlu1 %v1301_v7 }
 0x35c   : > { %1299 = vadd.xlane.f32.xlu0 %v1298_v10 }
 0x35d   : > { %v2451_v16 = vpop.eup %2205 }
 0x35e   : > { %v2453_v17 = vpop.eup %2207  ;;  %v1304_v18 = vsel %vm969_vm2, %v2451_v16, 0.0 }
 0x36c   : > { %818 = vrot.lane.b32.xlu1 %v2363_v12, %s2239_s27  ;;  %v1307_v12 = vsel %vm969_vm2, %v2453_v17, 0.0 }
 0x372   : > { %820 = vrot.lane.b32.xlu0 %v2361_v11, %s2239_s27  ;;  %v817_v11 = vpop.permute.xlu1 %816 }
 0x390   : > { %1305 = vadd.xlane.f32.xlu1 %v1304_v18 }
 0x391   : > { %1308 = vadd.xlane.f32.xlu0 %v1307_v12 }
 0x3e8   : > { %v1303_v20 = vpop.xlane.xlu1 %1302 }
 0x3e9   : > { %v1300_v21 = vpop.xlane.xlu0 %1299  ;;  %2209 = vrcp.f32 %v1303_v20 }
 0x3ea   : > { %2211 = vrcp.f32 %v1300_v21 }
 0x3ec   : > { %v819_v23 = vpop.permute.xlu1 %818 }
 0x3ed   : > { %v821_v24 = vpop.permute.xlu0 %820  ;;  %v826_v25 = vcombine.low %v815_v19, %v819_v23  ;;  %v827_v26 = vcombine.high %v815_v19, %v819_v23 }
 0x3ee   : > { %v842_v27 = vcombine.low %v817_v11, %v821_v24  ;;  %v843_v28 = vcombine.high %v817_v11, %v821_v24 }
 0x3ef   : > { %v834_v29 = vrot.slane %v826_v25, %v2371_v22  ;;  %v841_v31 = vrot.slane %v827_v26, %v2371_v22 }
 0x3f0   : > { %v850_v32 = vrot.slane %v842_v27, %v2371_v22  ;;  %v857_v33 = vrot.slane %v843_v28, %v2371_v22 }
 0x3f2   : > { %v858_v34 = vcombine.low %v834_v29, %v850_v32  ;;  %v859_v35 = vcombine.high %v834_v29, %v850_v32  ;;  %v874_v36 = vcombine.low %v841_v31, %v857_v33  ;;  %v875_v37 = vcombine.high %v841_v31, %v857_v33 }
 0x3f3   : > { %v2210_v56 = vpop.eup %2209 }
 0x3f4   : > { %v866_v38 = vrot.slane %v858_v34, %v2381_v30  ;;  %v873_v39 = vrot.slane %v859_v35, %v2381_v30  ;;  %v882_v40 = vrot.slane %v874_v36, %v2381_v30  ;;  %v889_v41 = vrot.slane %v875_v37, %v2381_v30  ;;  %v2212_v59 = vpop.eup %2211 }
 0x3f5   : > { %v1314_v0 = vmul.f32 %v2212_v59, %v2443_v5  ;;  %v1315_v2 = vmul.f32 %v2210_v56, %v2441_v4 }
 0x3f6   : > { %v894_v42 = vcombine.low %v866_v38, %v873_v39  ;;  %v2024_v43 = vcombine.high %v866_v38, %v873_v39  ;;  %v910_v44 = vcombine.low %v882_v40, %v889_v41  ;;  %v2025_v45 = vcombine.high %v882_v40, %v889_v41 }
 0x3f7   : > { %v1318_v14 = vpack.c.bf16 %v1314_v0, %v1314_v0  ;;  %v1319_v15 = vpack.c.bf16 %v1315_v2, %v1315_v2 }
 0x3f8   : > { %v901_v46 = vrot.slane %v894_v42, %v2371_v22  ;;  %v909_v47 = vrot.slane %v2024_v43, %v2371_v22  ;;  %v917_v48 = vrot.slane %v910_v44, %v2371_v22  ;;  %v925_v49 = vrot.slane %v2025_v45, %v2371_v22 }
 0x3fa   : > { %v926_v50 = vcombine.low %v901_v46, %v909_v47  ;;  %v927_v51 = vcombine.high %v901_v46, %v909_v47  ;;  %v942_v52 = vcombine.low %v917_v48, %v925_v49  ;;  %v943_v53 = vcombine.high %v917_v48, %v925_v49 }
 0x3fc   : > { %v934_v54 = vrot.slane %v926_v50, %v2381_v30  ;;  %v941_v55 = vrot.slane %v927_v51, %v2381_v30  ;;  %v950_v57 = vrot.slane %v942_v52, %v2381_v30  ;;  %v957_v58 = vrot.slane %v943_v53, %v2381_v30  ;;  %v2193_v52 = vld [vmem:[%s2589_s5] sm:$0xff]  }
 0x3fe   : > { %v958_v60 = vcombine.low %v934_v54, %v950_v57  ;;  %v959_v61 = vcombine.high %v934_v54, %v950_v57  ;;  %v960_v62 = vcombine.low %v941_v55, %v957_v58  ;;  %v961_v63 = vcombine.high %v941_v55, %v957_v58 }
 0x400   : > { %v1322_v7 = vpack.c.bf16 %v958_v60, %v958_v60  ;;  %v1323_v10 = vpack.c.bf16 %v959_v61, %v959_v61  ;;  %v1324_v9 = vpack.c.bf16 %v960_v62, %v960_v62  ;;  %v1325_v13 = vpack.c.bf16 %v961_v63, %v961_v63  ;;  %v2194_v61 = vld [vmem:[%s2589_s5 + $0x8] sm:$0xff]  }
 0x402   : > { %v1331_v6 = vsel %vm1329_vm3, %v1322_v7, 0  ;;  %v1377_v8 = vsel %vm1329_vm3, %v1323_v10, 0  ;;  %v1423_v4 = vsel %vm1329_vm3, %v1324_v9, 0  ;;  %v1469_v5 = vsel %vm1329_vm3, %v1325_v13, 0 }
 0x403   : > { %2120 = vmatpush3.bf16.msra.mxu1 %v1331_v6  ;;  %2126 = vmatpush3.bf16.msra.mxu0 %v1377_v8 }
 0x404   : > { %2131 = vmatprep.subr.bf16.mxu1 %v2231_v1  ;;  %2137 = vmatprep.subr.bf16.mxu0 %v2231_v1 }
 0x406   : > { %2122 = vmatmul.mubr.msk.bf16.vlgmr.msra.gmra.mrb[4].mxu1 %vm969_vm2, %v1318_v14  ;;  %2128 = vmatmul.mubr.msk.bf16.vlgmr.msra.gmra.mrb[8].mxu0 %vm969_vm2, %v1319_v15 }
 0x407   : > { %2132 = vmatpush3.bf16.msra.mxu1 %v1423_v4  ;;  %2138 = vmatpush3.bf16.msra.mxu0 %v1469_v5 }
 0x408   : > { %2133 = vmatprep.mubr.msk.bf16.mxu1 %vm2232_vm0, %v2231_v1  ;;  %2139 = vmatprep.mubr.msk.bf16.mxu0 %vm2232_vm0, %v2231_v1 }
 0x409   : > { %2143 = vmatprep.subr.bf16.mxu1 %v2231_v1  ;;  %2151 = vmatprep.subr.bf16.mxu0 %v2231_v1 }
 0x41d   : > { %v1306_v18 = vpop.xlane.xlu1 %1305 }
 0x41e   : > { %v1309_v12 = vpop.xlane.xlu0 %1308  ;;  %2213 = vrcp.f32 %v1306_v18 }
 0x41f   : > { %2215 = vrcp.f32 %v1309_v12 }
 0x428   : > { %v2214_v11 = vpop.eup %2213 }
 0x429   : > { %v2216_v19 = vpop.eup %2215  ;;  %v1316_v20 = vmul.f32 %v2214_v11, %v2451_v16 }
 0x42a   : > { %v1317_v21 = vmul.f32 %v2216_v19, %v2453_v17 }
 0x42b   : > { %v1320_v23 = vpack.c.bf16 %v1316_v20, %v1316_v20 }
 0x42c   : > { %v1321_v24 = vpack.c.bf16 %v1317_v21, %v1317_v21 }
 0x42d   : > { %2134 = vmatmul.mubr.msk.bf16.vlgmr.msra.gmra.mrb[8].mxu1 %vm969_vm2, %v1320_v23 }
 0x42e   : > { %2140 = vmatmul.mubr.msk.bf16.vlgmr.msra.gmra.mrb[12].mxu0 %vm969_vm2, %v1321_v24  ;;  %2147 = vmatprep.mubr.msk.bf16.mxu1 %vm2232_vm0, %v2231_v1  ;;  %v2041_v24 = vld [vmem:[%s2590_s6] ss:$0 sm:$0xff] }
 0x42f   : > { %2155 = vmatprep.mubr.msk.bf16.mxu0 %vm2232_vm0, %v2231_v1  ;;  %2144 = vmatpush3.bf16.msra.mxu1 %v2193_v52  ;;  %v2047_v52 = vld [vmem:[%s2593_s9] ss:$0 sm:$0xff] }
 0x430   : > { %2145 = vmatprep.subr.bf16.mxu1 %v2231_v1 }
 0x433   : > { %2146 = vmatpush3.bf16.msra.mxu1 %v2194_v61 }
 0x434   : > { %2159 = vmatprep.subr.bf16.mxu1 %v2231_v1 }
 0x4d9   : > { %v1367_v25 = vpop.f32.mrb[4].mxu1  ;;  %v1413_v26 = vpop.f32.mrb[8].mxu0 }
 0x4da   : > { %v2123_v27 = vpop.f32.mrb[5].mxu1  ;;  %v2129_v28 = vpop.f32.mrb[9].mxu0 }
 0x4db   : > { %v1370_v29 = vpop.f32.mrb[6].mxu1  ;;  %v1416_v16 = vpop.f32.mrb[10].mxu0 }
 0x4dc   : > { %v2124_v31 = vpop.f32.mrb[7].mxu1  ;;  %v2130_v17 = vpop.f32.mrb[11].mxu0 }
 0x500   : > { %v1459_v32 = vpop.f32.mrb[8].mxu1 }
 0x501   : > { %v1511_v33 = vcombine.low %v1367_v25, %v1459_v32  ;;  %v1512_v34 = vcombine.high %v1367_v25, %v1459_v32  ;;  %v1505_v35 = vpop.f32.mrb[12].mxu0  ;;  %v2135_v36 = vpop.f32.mrb[9].mxu1  ;;  %v452_v25 = vunpack.c.l.bf16 %v2343_v3  ;;  %v2195_v3 = vld [vmem:[%s2592_s8] sm:$0xff]  }
 0x502   : > { %v1527_v37 = vcombine.low %v1413_v26, %v1505_v35  ;;  %v1528_v38 = vcombine.high %v1413_v26, %v1505_v35  ;;  %v2141_v39 = vpop.f32.mrb[13].mxu0  ;;  %v1462_v40 = vpop.f32.mrb[10].mxu1  ;;  %2152 = vmatpush3.bf16.msra.mxu0 %v2195_v3 }
 0x503   : > { %v1519_v41 = vrot.slane %v1511_v33, %v2371_v22  ;;  %v1526_v42 = vrot.slane %v1512_v34, %v2371_v22  ;;  %v1508_v43 = vpop.f32.mrb[14].mxu0  ;;  %v2136_v44 = vpop.f32.mrb[11].mxu1  ;;  %2153 = vmatprep.subr.bf16.mxu0 %v2231_v1 }
 0x504   : > { %v1535_v45 = vrot.slane %v1527_v37, %v2371_v22  ;;  %v1542_v46 = vrot.slane %v1528_v38, %v2371_v22  ;;  %v2142_v47 = vpop.f32.mrb[15].mxu0  ;;  %v2196_v37 = vld [vmem:[%s2592_s8 + $0x8] sm:$0xff]   ;;  %v2046_v44 = vld [vmem:[%s2591_s7 + $0x1] ss:$0 sm:$0xff] }
 0x506   : > { %v1543_v48 = vcombine.low %v1519_v41, %v1535_v45  ;;  %v1544_v49 = vcombine.high %v1519_v41, %v1535_v45  ;;  %v1559_v50 = vcombine.low %v1526_v42, %v1542_v46  ;;  %v1560_v51 = vcombine.high %v1526_v42, %v1542_v46  ;;  %2154 = vmatpush3.bf16.msra.mxu0 %v2196_v37  ;;  %v2045_v42 = vld [vmem:[%s2591_s7] ss:$0 sm:$0xff] }
 0x508   : > { %v1551_v53 = vrot.slane %v1543_v48, %v2381_v30  ;;  %v1558_v54 = vrot.slane %v1544_v49, %v2381_v30  ;;  %v1567_v55 = vrot.slane %v1559_v50, %v2381_v30  ;;  %v1574_v56 = vrot.slane %v1560_v51, %v2381_v30  ;;  %v2197_v48 = vld [vmem:[%s2594_s10] sm:$0xff]   ;;  %v2198_v49 = vld [vmem:[%s2594_s10 + $0x8] sm:$0xff]   ;;  %v2199_v50 = vld [vmem:[%s2594_s10 + $0x10] sm:$0xff]  }
 0x509   : > { %v2200_v51 = vld [vmem:[%s2594_s10 + $0x18] sm:$0xff]  }
 0x50a   : > { %v1579_v57 = vcombine.low %v1551_v53, %v1558_v54  ;;  %v2039_v58 = vcombine.high %v1551_v53, %v1558_v54  ;;  %v1595_v59 = vcombine.low %v1567_v55, %v1574_v56  ;;  %v2040_v60 = vcombine.high %v1567_v55, %v1574_v56 }
 0x50c   : > { %v1586_v62 = vrot.slane %v1579_v57, %v2371_v22  ;;  %v1594_v63 = vrot.slane %v2039_v58, %v2371_v22  ;;  %v1602_v0 = vrot.slane %v1595_v59, %v2371_v22  ;;  %v1610_v2 = vrot.slane %v2040_v60, %v2371_v22 }
 0x50e   : > { %v1612_v7 = vcombine.high %v1586_v62, %v1594_v63  ;;  %v1628_v10 = vcombine.high %v1602_v0, %v1610_v2  ;;  %v1611_v6 = vcombine.low %v1586_v62, %v1594_v63  ;;  %v1627_v8 = vcombine.low %v1602_v0, %v1610_v2 }
 0x510   : > { %v1626_v9 = vrot.slane %v1612_v7, %v2381_v30  ;;  %v1642_v13 = vrot.slane %v1628_v10, %v2381_v30  ;;  %v1619_v14 = vrot.slane %v1611_v6, %v2381_v30  ;;  %v1635_v15 = vrot.slane %v1627_v8, %v2381_v30  ;;  %v2051_v10 = vld [vmem:[%s2595_s11] ss:$0 sm:$0xff] }
 0x512   : > { %v1645_v4 = vcombine.low %v1626_v9, %v1642_v13  ;;  %v1644_v5 = vcombine.high %v1619_v14, %v1635_v15  ;;  %v1646_v18 = vcombine.high %v1626_v9, %v1642_v13  ;;  %v1643_v12 = vcombine.low %v1619_v14, %v1635_v15 }
 0x514   : > { %1652 = vrot.lane.b32.xlu1 %v1645_v4, %s2240_s2  ;;  %1648 = vrot.lane.b32.xlu0 %v1644_v5, %s2241_s16  ;;  %s449_s16 = scalar_lea.vmem %s2597_s13, %s2014_s30 }
 0x518   : > { %1656 = vrot.lane.b32.xlu1 %v1646_v18, %s2242_s17 }
 0x586   : > { %v1653_v22 = vpop.permute.xlu1 %1652  ;;  %v1649_v11 = vpop.permute.xlu0 %1648 }
 0x587   : > { %v1659_v19 = vsel %vm969_vm2, %v1643_v12, %v1649_v11 }
 0x588   : > { %v1661_v21 = vsel %vm1660_vm4, %v1659_v19, %v1653_v22 }
 0x58a   : > { %v1657_v20 = vpop.permute.xlu1 %1656 }
 0x58b   : > { %v1663_v23 = vsel %vm1662_vm5, %v1661_v21, %v1657_v20 }
 0x58c   : > { %v1664_v30 = vpack.c.bf16 %v1663_v23, %v1663_v23 }
 0x58e   : > { %2148 = vmatmul.mubr.msk.bf16.vlgmr.msra.gmra.mrb[12].mxu1 %vm476_vm1, %v1664_v30  ;;  %v2057_v30 = vld [vmem:[%s2596_s12] ss:$0 sm:$0xff] }
 0x58f   : > { %2167 = vmatprep.mubr.msk.bf16.mxu1 %vm2232_vm0, %v2231_v1  ;;  %2160 = vmatpush3.bf16.msra.mxu1 %v2197_v48 }
 0x590   : > { %2161 = vmatprep.subr.bf16.mxu1 %v2231_v1 }
 0x593   : > { %2162 = vmatpush3.bf16.msra.mxu1 %v2198_v49 }
 0x594   : > { %2163 = vmatprep.subr.bf16.mxu1 %v2231_v1 }
 0x597   : > { %2164 = vmatpush3.bf16.msra.mxu1 %v2199_v50 }
 0x598   : > { %2165 = vmatprep.subr.bf16.mxu1 %v2231_v1 }
 0x59b   : > { %2166 = vmatpush3.bf16.msra.mxu1 %v2200_v51 }
 0x661   : > { %v1725_v26 = vpop.f32.mrb[12].mxu1 }
 0x662   : > { %v1726_v27 = vadd.f32 %v2041_v24, %v1725_v26  ;;  %v2149_v28 = vpop.f32.mrb[13].mxu1 }
 0x663   : > { %v1728_v29 = vpop.f32.mrb[14].mxu1 }
 0x664   : > { %v2150_v16 = vpop.f32.mrb[15].mxu1  ;;  %v1731_v31 = vadd.f32 %v1726_v27, %v452_v25  ;;  %v2058_v25 = vld [vmem:[%s2596_s12 + $0x1] ss:$0 sm:$0xff] }
 0x666   : > { %v1734_v17 = vsel %vm476_vm1, %v1731_v31, 0.0 }
 0x667   : > { %1735 = vadd.xlane.f32.xlu0 %v1734_v17 }
 0x6f4   : > { %v1736_v32 = vpop.xlane.xlu0 %1735 }
 0x6f5   : > { %v1738_v33 = vmul.f32 0.03125, %v1736_v32 }
 0x6f7   : > { %v1739_v34 = vsub.f32 %v1731_v31, %v1738_v33 }
 0x6f9   : > { %v1740_v35 = vmul.f32 %v1739_v34, %v1739_v34 }
 0x6fb   : > { %v1741_v36 = vsel %vm476_vm1, %v1740_v35, 0.0 }
 0x6fc   : > { %1742 = vadd.xlane.f32.xlu1 %v1741_v36 }
 0x789   : > { %v1743_v38 = vpop.xlane.xlu1 %1742 }
 0x78a   : > { %v1744_v39 = vmul.f32 0.03125, %v1743_v38 }
 0x78c   : > { %v1745_v40 = vadd.f32 1e-12, %v1744_v39 }
 0x78e   : > { %2217 = vrsqrt.f32 %v1745_v40 }
 0x798   : > { %v2218_v41 = vpop.eup %2217 }
 0x799   : > { %v1747_v43 = vmul.f32 %v2218_v41, %v1739_v34 }
 0x79b   : > { %v1752_v45 = vmul.f32 %v2045_v42, %v1747_v43 }
 0x79d   : > { %v1757_v46 = vadd.f32 %v2046_v44, %v1752_v45 }
 0x79f   : > { %v1758_v47 = vpack.c.bf16 %v1757_v46, %v1757_v46 }
 0x7a1   : > { %2156 = vmatmul.mubr.msk.bf16.vlgmr.msra.gmra.mrb[16].mxu0 %vm476_vm1, %v1758_v47 }
 0x874   : > { %v1819_v53 = vpop.f32.mrb[16].mxu0 }
 0x875   : > { %v1820_v54 = vadd.f32 %v2047_v52, %v1819_v53  ;;  %v2157_v55 = vpop.f32.mrb[17].mxu0 }
 0x876   : > { %v1822_v56 = vpop.f32.mrb[18].mxu0 }
 0x877   : > { %v1825_v57 = vmul.f32 %v1820_v54, %v1820_v54  ;;  %v2158_v58 = vpop.f32.mrb[19].mxu0 }
 0x879   : > { %v1826_v59 = vmul.f32 %v1825_v57, %v1820_v54 }
 0x87b   : > { %v1827_v60 = vmul.f32 0.044715, %v1826_v59 }
 0x87d   : > { %v1828_v61 = vadd.f32 %v1827_v60, %v1820_v54 }
 0x87f   : > { %v1829_v62 = vmul.f32 0.7978846, %v1828_v61 }
 0x881   : > { %2219 = vtanh.f32 %v1829_v62 }
 0x88b   : > { %v2220_v1 = vpop.eup %2219 }
 0x88c   : > { %v1831_v63 = vadd.f32 1.0, %v2220_v1 }
 0x88e   : > { %v1832_v0 = vmul.f32 0.5, %v1831_v63 }
 0x890   : > { %v1833_v2 = vmul.f32 %v1832_v0, %v1820_v54 }
 0x892   : > { %v1834_v7 = vpack.c.bf16 %v1833_v2, %v1833_v2 }
 0x894   : > { %2168 = vmatmul.mubr.msk.bf16.vlgmr.msra.gmra.mrb[16].mxu1 %vm1874_vm6, %v1834_v7 }
 0x967   : > { %v1912_v6 = vpop.f32.mrb[16].mxu1 }
 0x968   : > { %v1913_v8 = vadd.f32 %v2051_v10, %v1912_v6  ;;  %v2169_v9 = vpop.f32.mrb[17].mxu1 }
 0x969   : > { %v1915_v13 = vpop.f32.mrb[18].mxu1 }
 0x96a   : > { %v2170_v14 = vpop.f32.mrb[19].mxu1  ;;  %v1918_v15 = vadd.f32 %v1913_v8, %v1757_v46 }
 0x96c   : > { %v1921_v4 = vsel %vm476_vm1, %v1918_v15, 0.0 }
 0x96d   : > { %1922 = vadd.xlane.f32.xlu0 %v1921_v4 }
 0x9fa   : > { %v1923_v5 = vpop.xlane.xlu0 %1922 }
 0x9fb   : > { %v1924_v18 = vmul.f32 0.03125, %v1923_v5 }
 0x9fd   : > { %v1925_v12 = vsub.f32 %v1918_v15, %v1924_v18 }
 0x9ff   : > { %v1926_v22 = vmul.f32 %v1925_v12, %v1925_v12 }
 0xa01   : > { %v1927_v11 = vsel %vm476_vm1, %v1926_v22, 0.0 }
 0xa02   : > { %1928 = vadd.xlane.f32.xlu0 %v1927_v11 }
 0xa8f   : > { %v1929_v19 = vpop.xlane.xlu0 %1928 }
 0xa90   : > { %v1930_v20 = vmul.f32 0.03125, %v1929_v19 }
 0xa92   : > { %v1931_v21 = vadd.f32 1e-12, %v1930_v20 }
 0xa94   : > { %2221 = vrsqrt.f32 %v1931_v21 }
 0xa9e   : > { %v2222_v23 = vpop.eup %2221 }
 0xa9f   : > { %v1933_v24 = vmul.f32 %v2222_v23, %v1925_v12 }
 0xaa1   : > { %v1938_v26 = vmul.f32 %v2057_v30, %v1933_v24 }
 0xaa3   : > { %v1943_v27 = vadd.f32 %v2058_v25, %v1938_v26 }
 0xaa5   : > { %v1944_v28 = vpack.c.bf16 %v1943_v27, %v1943_v27 }
 0xaa7   : > { %1946 = vst.msk [vmem:[%s449_s16] sm:$0xf] %vm1945_vm7, %v1944_v28 }
 0xaa8 PF: > { %s23_s24 = sadd.s32 1, %s2229_s24  }
 0xaa9   : > { %p20_p4 = scmp.ge.s32.totalorder %s23_s24, 4  }
 0xaab   :  { %22 = sbr.rel (!%p20_p4) target bundleno = 1 (0x1), region = 105 }

// kernel: lacium_flower_forward.3
= control target key start
LH: loop header
LB: loop body
LE: loop exit
PB: predicated region body
PF: predicated region fallthrough
CT: control target
= control target key end

     0   :  { %s2343_s25 = smov 0   ;;  %s2623_s0 = inlined_call_operand.vmem [shape: bf16[2,8,32], index: 0, kind: input, shape index: {}]   ;;  %s2624_s1 = inlined_call_operand.vmem [shape: f32[2,1,8], index: 1, kind: input, shape index: {}]   ;;  %s2625_s2 = inlined_call_operand.vmem [shape: f32[2,32], index: 2, kind: input, shape index: {}]   ;;  %s2626_s3 = inlined_call_operand.vmem [shape: bf16[32,96], index: 3, kind: input, shape index: {}]   ;;  %s2627_s4 = inlined_call_operand.vmem [shape: f32[1,96], index: 4, kind: input, shape index: {}]   ;;  %s2628_s5 = inlined_call_operand.vmem [shape: bf16[32,32], index: 5, kind: input, shape index: {}]   ;;  %s2629_s6 = inlined_call_operand.vmem [shape: f32[1,32], index: 6, kind: input, shape index: {}]   ;;  %s2630_s7 = inlined_call_operand.vmem [shape: f32[2,32], index: 7, kind: input, shape index: {}]   ;;  %s2631_s8 = inlined_call_operand.vmem [shape: bf16[32,64], index: 8, kind: input, shape index: {}]   ;;  %s2632_s9 = inlined_call_operand.vmem [shape: f32[1,64], index: 9, kind: input, shape index: {}]   ;;  %s2633_s10 = inlined_call_operand.vmem [shape: bf16[64,32], index: 10, kind: input, shape index: {}]   ;;  %s2634_s11 = inlined_call_operand.vmem [shape: f32[1,32], index: 11, kind: input, shape index: {}]   ;;  %s2635_s12 = inlined_call_operand.vmem [shape: f32[2,32], index: 12, kind: input, shape index: {}]   ;;  %s2636_s13 = inlined_call_operand.vmem [shape: bf16[2,8,32], index: 13, kind: output, shape index: {}]  }
   0x1 LB: > { %s2035_s26 = sadd.s32 4294967295, %s2259_s25   ;;  %p2039_p0 = scmp.ge.s32.totalorder %s2259_s25, 1  ;;  %s2259_s25 = sphi %s2343_s25, %s23_s25  }
   0x2   : > { %p394_p1 = scmp.lt.s32.totalorder %s2259_s25, 3 }
   0x4   : > { %p395_p2 = pnand %p2039_p0, %p394_p1 }
   0x5   : > { %p439_p3 = scmp.lt.s32.totalorder (!%p395_p2), %s2035_s26, 1  ;;  %vm455_vm0 = vcmask (!%p395_p2), 261120   ;;  %v2219_v8 = vld [vmem:[%s2626_s3] sm:$0xff] (!%p395_p2)   ;;  %v2261_v9 = vmov (!%p395_p2), 0.0   ;;  %v2220_v10 = vld [vmem:[%s2626_s3 + $0x8] sm:$0xff] (!%p395_p2)   ;;  %vm2262_vm1 = vmmov (!%p395_p2), 0   ;;  %v562_v32 = vlaneseq (!%p395_p2) }
   0x6   : > { %398 = sbr.rel (%p395_p2) target bundleno = 3053 (0xbed), region = 72  ;;  %2119 = vmatprep.subr.bf16.mxu0 (!%p395_p2), %v2261_v9  ;;  %2132 = vmatprep.subr.mxu1 (!%p395_p2), %v2261_v9  ;;  %v2042_v15 = vld [vmem:[%s2625_s2] ss:$0 sm:$0xff] (!%p395_p2)  ;;  %v2043_v17 = vld [vmem:[%s2625_s2 + $0x1] ss:$0 sm:$0xff] (!%p395_p2)  ;;  %s2263_s24 = smov (!%p395_p2), 104  }
   0x7   : > { %2120 = vmatpush3.bf16.msra.mxu0 (!%p395_p2), %v2219_v8  ;;  %2123 = vmatprep.mubr.msk.bf16.mxu0 (!%p395_p2), %vm2262_vm1, %v2261_v9  ;;  %v2044_v21 = vld [vmem:[%s2627_s4] ss:$0 sm:$0xff] (!%p395_p2)  ;;  %s2264_s28 = smov (!%p395_p2), 120   ;;  %s2265_s29 = smov (!%p395_p2), 112   ;;  %v2267_v30 = vmov (!%p395_p2), 1983009808  }
   0x8   : > { %2121 = vmatprep.subr.bf16.mxu0 (!%p395_p2), %v2261_v9  ;;  %2134 = vmatprep.mubr.msk.f32.mxu1 (!%p395_p2), %vm2262_vm1, %v2261_v9  ;;  %v560_v31 = vunpack.c.l.s4 (!%p395_p2), %v2267_v30  ;;  %v563_v34 = vshrl.u32 (!%p395_p2), %v562_v32, 7  ;;  %v2268_v35 = vmov (!%p395_p2), 1934713408   ;;  %vm996_vm2 = vcmask (!%p395_p2), 64512   ;;  %s2269_s17 = smov (!%p395_p2), 64   ;;  %s2270_s22 = smov (!%p395_p2), 16  }
   0x9   : > { %v592_v36 = vunpack.c.l.s4 (!%p395_p2), %v2268_v35  ;;  %vm1356_vm3 = vcmask (!%p395_p2), 1043456   ;;  %s2271_s23 = smov (!%p395_p2), 8   ;;  %vm1687_vm4 = vcmask (!%p395_p2), 130048   ;;  %vm1689_vm5 = vcmask (!%p395_p2), 195584  }
   0xa   : > { %v561_v33 = vunpack.c.0.s8 (!%p395_p2), %v560_v31  ;;  %vm1900_vm6 = vcmask (!%p395_p2), 523264   ;;  %vm1971_vm7 = vcmask (!%p395_p2), 257024  }
   0xb   : > { %2122 = vmatpush3.bf16.msra.mxu0 (!%p395_p2), %v2220_v10  ;;  %v593_v43 = vunpack.c.0.s8 (!%p395_p2), %v592_v36 }
   0xc   : > { %2127 = vmatprep.subr.mxu0 (!%p395_p2), %v2261_v9  ;;  %v2410_v40 = vsub.s32 (!%p395_p2), %v561_v33, %v563_v34 }
   0xd   : > { %s2638_s26 = smov (!%p439_p3, %s2035_s26), 1  ;;  %v2420_v49 = vsub.s32 %v593_v43, %v563_v34 }
   0xe   : > { %s2040_s27 = sshll.u32 %s2638_s26, 2  ;;  %s445_s16 = scalar_lea.vmem %s2624_s1, %s2638_s26 }
   0xf   : > { %s442_s30 = scalar_lea.vmem %s2623_s0, %s2040_s27 }
  0x10   : > { %v451_v0 = vld [vmem:[%s442_s30] sm:$0xf]  ;;  %s2266_s30 = smov 96  }
  0x11   : > { %v452_v1 = vunpack.c.l.bf16 %v451_v0 }
  0x13   : > { %v456_v2 = vsel %vm455_vm0, %v452_v1, 0.0 }
  0x14   : > { %457 = vadd.xlane.f32.xlu0 %v456_v2 }
  0xa1   : > { %v458_v3 = vpop.xlane.xlu0 %457 }
  0xa2   : > { %v460_v4 = vmul.f32 0.03125, %v458_v3 }
  0xa4   : > { %v461_v5 = vsub.f32 %v452_v1, %v460_v4 }
  0xa6   : > { %v462_v6 = vmul.f32 %v461_v5, %v461_v5 }
  0xa8   : > { %v463_v7 = vsel %vm455_vm0, %v462_v6, 0.0 }
  0xa9   : > { %464 = vadd.xlane.f32.xlu0 %v463_v7 }
 0x136   : > { %v465_v11 = vpop.xlane.xlu0 %464 }
 0x137   : > { %v466_v12 = vmul.f32 0.03125, %v465_v11 }
 0x139   : > { %v467_v13 = vadd.f32 1e-12, %v466_v12 }
 0x13b   : > { %2229 = vrsqrt.f32 %v467_v13 }
 0x145   : > { %v2230_v14 = vpop.eup %2229 }
 0x146   : > { %v469_v16 = vmul.f32 %v2230_v14, %v461_v5 }
 0x148   : > { %v474_v18 = vmul.f32 %v2042_v15, %v469_v16 }
 0x14a   : > { %v2381_v19 = vadd.f32 %v2043_v17, %v474_v18 }
 0x14c   : > { %v480_v20 = vpack.c.bf16 %v2381_v19, %v2381_v19 }
 0x14e   : > { %2124 = vmatmul.mubr.msk.bf16.vlgmr.msra.gmra.mrb[0].mxu0 %vm455_vm0, %v480_v20 }
 0x14f   : > { %2129 = vmatprep.mubr.msk.f32.mxu0 %vm2262_vm1, %v2261_v9 }
 0x221   : > { %v541_v22 = vpop.f32.mrb[0].mxu0 }
 0x222   : > { %v2391_v23 = vadd.f32 %v2044_v21, %v541_v22  ;;  %v2125_v24 = vpop.f32.mrb[1].mxu0 }
 0x223   : > { %v544_v25 = vpop.f32.mrb[2].mxu0 }
 0x224   : > { %554 = vrot.lane.b32.xlu0 %v2391_v23, %s2263_s24  ;;  %548 = vrot.lane.b32.xlu1 %v2391_v23, %s2264_s28  ;;  %v2126_v26 = vpop.f32.mrb[3].mxu0  ;;  %s2272_s24 = smov 24   ;;  %s449_s28 = scalar_lea.vmem %s2636_s13, %s2040_s27 }
 0x228   : > { %551 = vrot.lane.b32.xlu1 %v2391_v23, %s2265_s29 }
 0x22c   : > { %693 = vrot.lane.b32.xlu1 %v2391_v23, %s2266_s30 }
 0x296   : > { %v2397_v27 = vpop.permute.xlu1 %548  ;;  %v2403_v29 = vpop.permute.xlu0 %554 }
 0x297   : > { %695 = vrot.lane.b32.xlu1 %v2397_v27, %s2266_s30  ;;  %v573_v41 = vcombine.low %v2397_v27, %v2403_v29  ;;  %v574_v42 = vcombine.high %v2397_v27, %v2403_v29 }
 0x299   : > { %v581_v47 = vrot.slane %v573_v41, %v2410_v40  ;;  %v588_v48 = vrot.slane %v574_v42, %v2410_v40 }
 0x29a   : > { %v2400_v28 = vpop.permute.xlu1 %551 }
 0x29b   : > { %697 = vrot.lane.b32.xlu1 %v2400_v28, %s2266_s30  ;;  %v557_v37 = vcombine.low %v2391_v23, %v2400_v28  ;;  %v558_v38 = vcombine.high %v2391_v23, %v2400_v28 }
 0x29d   : > { %v565_v44 = vrot.slane %v557_v37, %v2410_v40  ;;  %v572_v45 = vrot.slane %v558_v38, %v2410_v40 }
 0x29e   : > { %v694_v39 = vpop.permute.xlu1 %693 }
 0x29f   : > { %699 = vrot.lane.b32.xlu1 %v2403_v29, %s2266_s30  ;;  %v589_v50 = vcombine.low %v565_v44, %v581_v47  ;;  %v590_v51 = vcombine.high %v565_v44, %v581_v47  ;;  %v605_v52 = vcombine.low %v572_v45, %v588_v48  ;;  %v606_v53 = vcombine.high %v572_v45, %v588_v48 }
 0x2a1   : > { %v597_v57 = vrot.slane %v589_v50, %v2420_v49  ;;  %v604_v58 = vrot.slane %v590_v51, %v2420_v49  ;;  %v613_v59 = vrot.slane %v605_v52, %v2420_v49  ;;  %v620_v60 = vrot.slane %v606_v53, %v2420_v49 }
 0x2a3   : > { %v625_v4 = vcombine.low %v597_v57, %v604_v58  ;;  %v2048_v5 = vcombine.high %v597_v57, %v604_v58  ;;  %v641_v6 = vcombine.low %v613_v59, %v620_v60  ;;  %v2049_v7 = vcombine.high %v613_v59, %v620_v60  ;;  %v2054_v60 = vld [vmem:[%s445_s16] ss:$0 sm:$0xff] }
 0x2a5   : > { %v632_v17 = vrot.slane %v625_v4, %v2410_v40  ;;  %v640_v18 = vrot.slane %v2048_v5, %v2410_v40  ;;  %v648_v20 = vrot.slane %v641_v6, %v2410_v40  ;;  %v656_v21 = vrot.slane %v2049_v7, %v2410_v40 }
 0x2a7   : > { %v657_v34 = vcombine.low %v632_v17, %v640_v18  ;;  %v673_v35 = vcombine.low %v648_v20, %v656_v21  ;;  %v658_v43 = vcombine.high %v632_v17, %v640_v18 }
 0x2a9   : > { %v665_v44 = vrot.slane %v657_v34, %v2420_v49  ;;  %v681_v45 = vrot.slane %v673_v35, %v2420_v49  ;;  %v672_v52 = vrot.slane %v658_v43, %v2420_v49 }
 0x2ab   : > { %v689_v53 = vcombine.low %v665_v44, %v681_v45 }
 0x309   : > { %v696_v46 = vpop.permute.xlu1 %695 }
 0x30d   : > { %v698_v54 = vpop.permute.xlu1 %697 }
 0x30e   : > { %v705_v55 = vcombine.low %v694_v39, %v698_v54  ;;  %v706_v56 = vcombine.high %v694_v39, %v698_v54  ;;  %v690_v54 = vcombine.high %v665_v44, %v681_v45 }
 0x310   : > { %v713_v0 = vrot.slane %v705_v55, %v2410_v40  ;;  %v720_v1 = vrot.slane %v706_v56, %v2410_v40 }
 0x311   : > { %v700_v61 = vpop.permute.xlu1 %699 }
 0x312   : > { %v721_v62 = vcombine.low %v696_v46, %v700_v61  ;;  %v722_v63 = vcombine.high %v696_v46, %v700_v61  ;;  %v674_v46 = vcombine.high %v648_v20, %v656_v21 }
 0x314   : > { %v729_v2 = vrot.slane %v721_v62, %v2410_v40  ;;  %v736_v3 = vrot.slane %v722_v63, %v2410_v40  ;;  %v688_v55 = vrot.slane %v674_v46, %v2420_v49 }
 0x316   : > { %v737_v8 = vcombine.low %v713_v0, %v729_v2  ;;  %v738_v10 = vcombine.high %v713_v0, %v729_v2  ;;  %v753_v11 = vcombine.low %v720_v1, %v736_v3  ;;  %v754_v12 = vcombine.high %v720_v1, %v736_v3 }
 0x317   : > { %v691_v58 = vcombine.low %v672_v52, %v688_v55  ;;  %v692_v59 = vcombine.high %v672_v52, %v688_v55 }
 0x318   : > { %v745_v13 = vrot.slane %v737_v8, %v2420_v49  ;;  %v752_v14 = vrot.slane %v738_v10, %v2420_v49  ;;  %v761_v15 = vrot.slane %v753_v11, %v2420_v49  ;;  %v768_v16 = vrot.slane %v754_v12, %v2420_v49 }
 0x31a   : > { %v773_v22 = vcombine.low %v745_v13, %v752_v14  ;;  %v2050_v24 = vcombine.high %v745_v13, %v752_v14  ;;  %v789_v25 = vcombine.low %v761_v15, %v768_v16  ;;  %v2051_v26 = vcombine.high %v761_v15, %v768_v16 }
 0x31c   : > { %v780_v30 = vrot.slane %v773_v22, %v2410_v40  ;;  %v788_v31 = vrot.slane %v2050_v24, %v2410_v40  ;;  %v796_v32 = vrot.slane %v789_v25, %v2410_v40  ;;  %v804_v33 = vrot.slane %v2051_v26, %v2410_v40 }
 0x31e   : > { %v805_v36 = vcombine.low %v780_v30, %v788_v31  ;;  %v806_v37 = vcombine.high %v780_v30, %v788_v31  ;;  %v821_v38 = vcombine.low %v796_v32, %v804_v33  ;;  %v822_v39 = vcombine.high %v796_v32, %v804_v33 }
 0x320   : > { %v813_v41 = vrot.slane %v805_v36, %v2420_v49  ;;  %v829_v42 = vrot.slane %v821_v38, %v2420_v49  ;;  %v820_v50 = vrot.slane %v806_v37, %v2420_v49  ;;  %v836_v51 = vrot.slane %v822_v39, %v2420_v49 }
 0x322   : > { %v837_v47 = vcombine.low %v813_v41, %v829_v42  ;;  %v838_v48 = vcombine.high %v813_v41, %v829_v42  ;;  %v839_v56 = vcombine.low %v820_v50, %v836_v51  ;;  %v840_v57 = vcombine.high %v820_v50, %v836_v51 }
 0x324   : > { %2128 = vmatpush3.xpose.msk.msra.mxu0 %vm996_vm2, %v837_v47  ;;  %2133 = vmatpush3.xpose.msk.msra.mxu1 %vm996_vm2, %v838_v48 }
 0x325   : > { %2137 = vmatprep.subr.mxu1 %v2261_v9  ;;  %2142 = vmatprep.subr.mxu0 %v2261_v9 }
 0x327   : > { %2130 = vmatmul.mubr.msk.f32.vlgmr.msra.gmra.mrb[4].mxu0 %vm996_vm2, %v689_v53  ;;  %2135 = vmatmul.mubr.msk.f32.vlgmr.msra.gmra.mrb[0].mxu1 %vm996_vm2, %v690_v54 }
 0x328   : > { %2138 = vmatpush3.xpose.msk.msra.mxu1 %vm996_vm2, %v839_v56  ;;  %2143 = vmatpush3.xpose.msk.msra.mxu0 %vm996_vm2, %v840_v57 }
 0x329   : > { %2139 = vmatprep.mubr.msk.f32.mxu1 %vm2262_vm1, %v2261_v9  ;;  %2144 = vmatprep.mubr.msk.f32.mxu0 %vm2262_vm1, %v2261_v9 }
 0x32a   : > { %2147 = vmatprep.subr.bf16.mxu1 %v2261_v9  ;;  %2153 = vmatprep.subr.bf16.mxu0 %v2261_v9 }
 0x32b   : > { %2140 = vmatmul.mubr.msk.f32.vlgmr.msra.gmra.mrb[2].mxu1 %vm996_vm2, %v691_v58  ;;  %2145 = vmatmul.mubr.msk.f32.vlgmr.msra.gmra.mrb[6].mxu0 %vm996_vm2, %v692_v59 }
 0x32c   : > { %2149 = vmatprep.mubr.msk.bf16.mxu1 %vm2262_vm1, %v2261_v9  ;;  %2155 = vmatprep.mubr.msk.bf16.mxu0 %vm2262_vm1, %v2261_v9 }
 0x3fa   : > { %v1069_v61 = vpop.f32.mrb[4].mxu0  ;;  %v1145_v62 = vpop.f32.mrb[0].mxu1 }
 0x3fb   : > { %v1070_v63 = vadd.f32 %v2054_v60, %v1069_v61  ;;  %v1146_v0 = vadd.f32 %v2054_v60, %v1145_v62  ;;  %v2131_v1 = vpop.f32.mrb[5].mxu0  ;;  %v2136_v2 = vpop.f32.mrb[1].mxu1 }
 0x3fd   : > { %v1304_v3 = vsel %vm996_vm2, %v1146_v0, -inf  ;;  %v1301_v4 = vsel %vm996_vm2, %v1070_v63, -inf }
 0x3fe   : > { %1305 = vmax.xlane.f32.xlu0 %v1304_v3  ;;  %v1221_v5 = vpop.f32.mrb[2].mxu1  ;;  %1302 = vmax.xlane.f32.xlu1 %v1301_v4  ;;  %v1297_v6 = vpop.f32.mrb[6].mxu0 }
 0x3ff   : > { %v1222_v7 = vadd.f32 %v2054_v60, %v1221_v5  ;;  %v1298_v8 = vadd.f32 %v2054_v60, %v1297_v6  ;;  %v2141_v10 = vpop.f32.mrb[3].mxu1  ;;  %v2146_v11 = vpop.f32.mrb[7].mxu0 }
 0x401   : > { %v1307_v12 = vsel %vm996_vm2, %v1222_v7, -inf  ;;  %v1310_v13 = vsel %vm996_vm2, %v1298_v8, -inf }
 0x402   : > { %1308 = vmax.xlane.f32.xlu1 %v1307_v12  ;;  %1311 = vmax.xlane.f32.xlu0 %v1310_v13 }
 0x413   : > { %841 = vrot.lane.b32.xlu1 %v2391_v23, %s2269_s17 }
 0x48b   : > { %v1306_v14 = vpop.xlane.xlu0 %1305  ;;  %v1303_v15 = vpop.xlane.xlu1 %1302 }
 0x48c   : > { %v1314_v16 = vsub.f32 %v1146_v0, %v1306_v14  ;;  %v1313_v17 = vsub.f32 %v1070_v63, %v1303_v15 }
 0x48e   : > { %v1319_v18 = vmul.f32 1.442695, %v1314_v16  ;;  %v1317_v20 = vmul.f32 1.442695, %v1313_v17 }
 0x48f   : > { %v1309_v23 = vpop.xlane.xlu1 %1308  ;;  %v1312_v30 = vpop.xlane.xlu0 %1311 }
 0x490   : > { %2231 = vpow2.f32 %v1319_v18  ;;  %v1315_v26 = vsub.f32 %v1222_v7, %v1309_v23  ;;  %v1316_v32 = vsub.f32 %v1298_v8, %v1312_v30 }
 0x491   : > { %2233 = vpow2.f32 %v1317_v20 }
 0x492   : > { %v1321_v31 = vmul.f32 1.442695, %v1315_v26  ;;  %v1323_v33 = vmul.f32 1.442695, %v1316_v32 }
 0x494   : > { %2235 = vpow2.f32 %v1321_v31 }
 0x495   : > { %2237 = vpow2.f32 %v1323_v33 }
 0x49a   : > { %v2479_v21 = vpop.eup %2231 }
 0x49b   : > { %v2481_v22 = vpop.eup %2233  ;;  %v1328_v24 = vsel %vm996_vm2, %v2479_v21, 0.0 }
 0x49c   : > { %v1325_v25 = vsel %vm996_vm2, %v2481_v22, 0.0  ;;  %1329 = vadd.xlane.f32.xlu0 %v1328_v24 }
 0x49d   : > { %1326 = vadd.xlane.f32.xlu1 %v1325_v25 }
 0x49e   : > { %v2490_v34 = vpop.eup %2235 }
 0x49f   : > { %v1331_v35 = vsel %vm996_vm2, %v2490_v34, 0.0  ;;  %v2494_v36 = vpop.eup %2237 }
 0x4ae   : > { %845 = vrot.lane.b32.xlu1 %v2400_v28, %s2269_s17  ;;  %v1334_v28 = vsel %vm996_vm2, %v2494_v36, 0.0 }
 0x4b2   : > { %847 = vrot.lane.b32.xlu1 %v2403_v29, %s2269_s17  ;;  %843 = vrot.lane.b32.xlu0 %v2397_v27, %s2269_s17  ;;  %v842_v27 = vpop.permute.xlu1 %841 }
 0x4d1   : > { %1332 = vadd.xlane.f32.xlu0 %v1331_v35 }
 0x4d6   : > { %1335 = vadd.xlane.f32.xlu1 %v1334_v28 }
 0x529   : > { %v1330_v37 = vpop.xlane.xlu0 %1329 }
 0x52a   : > { %v1327_v29 = vpop.xlane.xlu1 %1326  ;;  %2239 = vrcp.f32 %v1330_v37 }
 0x52b   : > { %2241 = vrcp.f32 %v1327_v29 }
 0x52d   : > { %v844_v42 = vpop.permute.xlu0 %843 }
 0x52e   : > { %v846_v38 = vpop.permute.xlu1 %845 }
 0x52f   : > { %v853_v39 = vcombine.low %v842_v27, %v846_v38  ;;  %v854_v41 = vcombine.high %v842_v27, %v846_v38 }
 0x531   : > { %v861_v46 = vrot.slane %v853_v39, %v2410_v40  ;;  %v868_v47 = vrot.slane %v854_v41, %v2410_v40 }
 0x532   : > { %v848_v43 = vpop.permute.xlu1 %847 }
 0x533   : > { %v869_v44 = vcombine.low %v844_v42, %v848_v43  ;;  %v870_v45 = vcombine.high %v844_v42, %v848_v43 }
 0x534   : > { %v2240_v7 = vpop.eup %2239 }
 0x535   : > { %v877_v48 = vrot.slane %v869_v44, %v2410_v40  ;;  %v884_v50 = vrot.slane %v870_v45, %v2410_v40  ;;  %v2242_v13 = vpop.eup %2241  ;;  %v1342_v20 = vmul.f32 %v2240_v7, %v2479_v21 }
 0x536   : > { %v1341_v18 = vmul.f32 %v2242_v13, %v2481_v22 }
 0x537   : > { %v885_v51 = vcombine.low %v861_v46, %v877_v48  ;;  %v886_v52 = vcombine.high %v861_v46, %v877_v48  ;;  %v901_v53 = vcombine.low %v868_v47, %v884_v50  ;;  %v902_v54 = vcombine.high %v868_v47, %v884_v50 }
 0x538   : > { %v1345_v32 = vpack.c.bf16 %v1341_v18, %v1341_v18  ;;  %v1346_v33 = vpack.c.bf16 %v1342_v20, %v1342_v20 }
 0x539   : > { %v893_v55 = vrot.slane %v885_v51, %v2420_v49  ;;  %v900_v56 = vrot.slane %v886_v52, %v2420_v49  ;;  %v909_v57 = vrot.slane %v901_v53, %v2420_v49  ;;  %v916_v58 = vrot.slane %v902_v54, %v2420_v49 }
 0x53b   : > { %v921_v59 = vcombine.low %v893_v55, %v900_v56  ;;  %v2052_v60 = vcombine.high %v893_v55, %v900_v56  ;;  %v937_v61 = vcombine.low %v909_v57, %v916_v58  ;;  %v2053_v62 = vcombine.high %v909_v57, %v916_v58 }
 0x53d   : > { %v928_v63 = vrot.slane %v921_v59, %v2410_v40  ;;  %v936_v0 = vrot.slane %v2052_v60, %v2410_v40  ;;  %v944_v1 = vrot.slane %v937_v61, %v2410_v40  ;;  %v952_v2 = vrot.slane %v2053_v62, %v2410_v40 }
 0x53f   : > { %v953_v3 = vcombine.low %v928_v63, %v936_v0  ;;  %v969_v4 = vcombine.low %v944_v1, %v952_v2  ;;  %v954_v5 = vcombine.high %v928_v63, %v936_v0  ;;  %v970_v6 = vcombine.high %v944_v1, %v952_v2  ;;  %v2221_v1 = vld [vmem:[%s2628_s5] sm:$0xff]  }
 0x541   : > { %v961_v8 = vrot.slane %v953_v3, %v2420_v49  ;;  %v977_v10 = vrot.slane %v969_v4, %v2420_v49  ;;  %v968_v11 = vrot.slane %v954_v5, %v2420_v49  ;;  %v984_v12 = vrot.slane %v970_v6, %v2420_v49 }
 0x543   : > { %v985_v14 = vcombine.low %v961_v8, %v977_v10  ;;  %v986_v15 = vcombine.high %v961_v8, %v977_v10  ;;  %v987_v16 = vcombine.low %v968_v11, %v984_v12  ;;  %v988_v17 = vcombine.high %v968_v11, %v984_v12  ;;  %v2222_v11 = vld [vmem:[%s2628_s5 + $0x8] sm:$0xff]  }
 0x545   : > { %v1349_v24 = vpack.c.bf16 %v985_v14, %v985_v14  ;;  %v1350_v25 = vpack.c.bf16 %v986_v15, %v986_v15  ;;  %v1351_v30 = vpack.c.bf16 %v987_v16, %v987_v16  ;;  %v1352_v31 = vpack.c.bf16 %v988_v17, %v988_v17 }
 0x547   : > { %v1358_v23 = vsel %vm1356_vm3, %v1349_v24, 0  ;;  %v1404_v26 = vsel %vm1356_vm3, %v1350_v25, 0  ;;  %v1450_v21 = vsel %vm1356_vm3, %v1351_v30, 0  ;;  %v1496_v22 = vsel %vm1356_vm3, %v1352_v31, 0 }
 0x548   : > { %2148 = vmatpush3.bf16.msra.mxu1 %v1358_v23  ;;  %2154 = vmatpush3.bf16.msra.mxu0 %v1404_v26 }
 0x549   : > { %2159 = vmatprep.subr.bf16.mxu1 %v2261_v9  ;;  %2165 = vmatprep.subr.bf16.mxu0 %v2261_v9 }
 0x54b   : > { %2150 = vmatmul.mubr.msk.bf16.vlgmr.msra.gmra.mrb[4].mxu1 %vm996_vm2, %v1345_v32  ;;  %2156 = vmatmul.mubr.msk.bf16.vlgmr.msra.gmra.mrb[8].mxu0 %vm996_vm2, %v1346_v33 }
 0x54c   : > { %2160 = vmatpush3.bf16.msra.mxu1 %v1450_v21  ;;  %2166 = vmatpush3.bf16.msra.mxu0 %v1496_v22 }
 0x54d   : > { %2161 = vmatprep.mubr.msk.bf16.mxu1 %vm2262_vm1, %v2261_v9  ;;  %2167 = vmatprep.mubr.msk.bf16.mxu0 %vm2262_vm1, %v2261_v9 }
 0x54e   : > { %2171 = vmatprep.subr.bf16.mxu1 %v2261_v9  ;;  %2179 = vmatprep.subr.bf16.mxu0 %v2261_v9 }
 0x55e   : > { %v1333_v35 = vpop.xlane.xlu0 %1332 }
 0x55f   : > { %2243 = vrcp.f32 %v1333_v35 }
 0x563   : > { %v1336_v28 = vpop.xlane.xlu1 %1335 }
 0x564   : > { %2245 = vrcp.f32 %v1336_v28 }
 0x569   : > { %v2244_v27 = vpop.eup %2243 }
 0x56a   : > { %v1343_v29 = vmul.f32 %v2244_v27, %v2490_v34 }
 0x56c   : > { %v1347_v37 = vpack.c.bf16 %v1343_v29, %v1343_v29 }
 0x56e   : > { %v2246_v38 = vpop.eup %2245  ;;  %2162 = vmatmul.mubr.msk.bf16.vlgmr.msra.gmra.mrb[8].mxu1 %vm996_vm2, %v1347_v37 }
 0x56f   : > { %v1344_v39 = vmul.f32 %v2246_v38, %v2494_v36  ;;  %2175 = vmatprep.mubr.msk.bf16.mxu1 %vm2262_vm1, %v2261_v9  ;;  %2172 = vmatpush3.bf16.msra.mxu1 %v2221_v1  ;;  %v2226_v1 = vld [vmem:[%s2633_s10 + $0x8] sm:$0xff]  }
 0x570   : > { %2173 = vmatprep.subr.bf16.mxu1 %v2261_v9 }
 0x571   : > { %v1348_v41 = vpack.c.bf16 %v1344_v39, %v1344_v39 }
 0x573   : > { %2168 = vmatmul.mubr.msk.bf16.vlgmr.msra.gmra.mrb[12].mxu0 %vm996_vm2, %v1348_v41  ;;  %2174 = vmatpush3.bf16.msra.mxu1 %v2222_v11  ;;  %v2069_v41 = vld [vmem:[%s2629_s6] ss:$0 sm:$0xff] }
 0x574   : > { %2183 = vmatprep.mubr.msk.bf16.mxu0 %vm2262_vm1, %v2261_v9  ;;  %2187 = vmatprep.subr.bf16.mxu1 %v2261_v9 }
 0x61e   : > { %v1394_v42 = vpop.f32.mrb[4].mxu1  ;;  %v1440_v43 = vpop.f32.mrb[8].mxu0 }
 0x61f   : > { %v2151_v44 = vpop.f32.mrb[5].mxu1  ;;  %v2157_v45 = vpop.f32.mrb[9].mxu0 }
 0x620   : > { %v1397_v34 = vpop.f32.mrb[6].mxu1  ;;  %v1443_v46 = vpop.f32.mrb[10].mxu0 }
 0x621   : > { %v2152_v47 = vpop.f32.mrb[7].mxu1  ;;  %v2158_v48 = vpop.f32.mrb[11].mxu0 }
 0x641   : > { %v1486_v50 = vpop.f32.mrb[8].mxu1 }
 0x642   : > { %v1538_v51 = vcombine.low %v1394_v42, %v1486_v50  ;;  %v1539_v36 = vcombine.high %v1394_v42, %v1486_v50  ;;  %v2163_v52 = vpop.f32.mrb[9].mxu1 }
 0x643   : > { %v1489_v53 = vpop.f32.mrb[10].mxu1 }
 0x644   : > { %v2164_v54 = vpop.f32.mrb[11].mxu1  ;;  %v1546_v60 = vrot.slane %v1538_v51, %v2410_v40  ;;  %v1553_v61 = vrot.slane %v1539_v36, %v2410_v40  ;;  %v2223_v53 = vld [vmem:[%s2631_s8] sm:$0xff]  }
 0x645   : > { %2180 = vmatpush3.bf16.msra.mxu0 %v2223_v53 }
 0x646   : > { %v1532_v55 = vpop.f32.mrb[12].mxu0  ;;  %2181 = vmatprep.subr.bf16.mxu0 %v2261_v9 }
 0x647   : > { %v1554_v56 = vcombine.low %v1440_v43, %v1532_v55  ;;  %v1555_v57 = vcombine.high %v1440_v43, %v1532_v55  ;;  %v2169_v58 = vpop.f32.mrb[13].mxu0 }
 0x648   : > { %v1535_v59 = vpop.f32.mrb[14].mxu0  ;;  %v2073_v58 = vld [vmem:[%s2630_s7] ss:$0 sm:$0xff] }
 0x649   : > { %v1562_v62 = vrot.slane %v1554_v56, %v2410_v40  ;;  %v1569_v63 = vrot.slane %v1555_v57, %v2410_v40  ;;  %v2170_v0 = vpop.f32.mrb[15].mxu0 }
 0x64a   : > { %v2225_v0 = vld [vmem:[%s2633_s10] sm:$0xff]  }
 0x64b   : > { %v1570_v2 = vcombine.low %v1546_v60, %v1562_v62  ;;  %v1571_v3 = vcombine.high %v1546_v60, %v1562_v62  ;;  %v1586_v4 = vcombine.low %v1553_v61, %v1569_v63  ;;  %v1587_v5 = vcombine.high %v1553_v61, %v1569_v63  ;;  %v2074_v60 = vld [vmem:[%s2630_s7 + $0x1] ss:$0 sm:$0xff] }
 0x64d   : > { %v1578_v6 = vrot.slane %v1570_v2, %v2420_v49  ;;  %v1585_v7 = vrot.slane %v1571_v3, %v2420_v49  ;;  %v1594_v8 = vrot.slane %v1586_v4, %v2420_v49  ;;  %v1601_v10 = vrot.slane %v1587_v5, %v2420_v49  ;;  %v2227_v2 = vld [vmem:[%s2633_s10 + $0x10] sm:$0xff]   ;;  %v2228_v3 = vld [vmem:[%s2633_s10 + $0x18] sm:$0xff]   ;;  %v2075_v4 = vld [vmem:[%s2632_s9] ss:$0 sm:$0xff] }
 0x64f   : > { %v1606_v12 = vcombine.low %v1578_v6, %v1585_v7  ;;  %v2067_v13 = vcombine.high %v1578_v6, %v1585_v7  ;;  %v1622_v14 = vcombine.low %v1594_v8, %v1601_v10  ;;  %v2068_v15 = vcombine.high %v1594_v8, %v1601_v10 }
 0x651   : > { %v1613_v16 = vrot.slane %v1606_v12, %v2410_v40  ;;  %v1621_v17 = vrot.slane %v2067_v13, %v2410_v40  ;;  %v1629_v18 = vrot.slane %v1622_v14, %v2410_v40  ;;  %v1637_v20 = vrot.slane %v2068_v15, %v2410_v40 }
 0x653   : > { %v1639_v24 = vcombine.high %v1613_v16, %v1621_v17  ;;  %v1655_v25 = vcombine.high %v1629_v18, %v1637_v20  ;;  %v1638_v23 = vcombine.low %v1613_v16, %v1621_v17  ;;  %v1654_v26 = vcombine.low %v1629_v18, %v1637_v20 }
 0x655   : > { %v1653_v30 = vrot.slane %v1639_v24, %v2420_v49  ;;  %v1669_v31 = vrot.slane %v1655_v25, %v2420_v49  ;;  %v1646_v32 = vrot.slane %v1638_v23, %v2420_v49  ;;  %v1662_v33 = vrot.slane %v1654_v26, %v2420_v49  ;;  %v2079_v24 = vld [vmem:[%s2634_s11] ss:$0 sm:$0xff] }
 0x657   : > { %v1672_v21 = vcombine.low %v1653_v30, %v1669_v31  ;;  %v1671_v22 = vcombine.high %v1646_v32, %v1662_v33  ;;  %v1673_v35 = vcombine.high %v1653_v30, %v1669_v31  ;;  %v1670_v28 = vcombine.low %v1646_v32, %v1662_v33 }
 0x659   : > { %1679 = vrot.lane.b32.xlu1 %v1672_v21, %s2270_s22  ;;  %1675 = vrot.lane.b32.xlu0 %v1671_v22, %s2271_s23 }
 0x65d   : > { %1683 = vrot.lane.b32.xlu0 %v1673_v35, %s2272_s24 }
 0x6cb   : > { %v1676_v40 = vpop.permute.xlu0 %1675  ;;  %v1680_v27 = vpop.permute.xlu1 %1679 }
 0x6cc   : > { %v1686_v29 = vsel %vm996_vm2, %v1670_v28, %v1676_v40 }
 0x6cd   : > { %v1688_v38 = vsel %vm1687_vm4, %v1686_v29, %v1680_v27 }
 0x6cf   : > { %v1684_v37 = vpop.permute.xlu0 %1683 }
 0x6d0   : > { %v1690_v39 = vsel %vm1689_vm5, %v1688_v38, %v1684_v37 }
 0x6d1   : > { %v1691_v49 = vpack.c.bf16 %v1690_v39, %v1690_v39  ;;  %v2085_v39 = vld [vmem:[%s2635_s12] ss:$0 sm:$0xff] }
 0x6d3   : > { %2176 = vmatmul.mubr.msk.bf16.vlgmr.msra.gmra.mrb[12].mxu1 %vm455_vm0, %v1691_v49 }
 0x6d4   : > { %2195 = vmatprep.mubr.msk.bf16.mxu1 %vm2262_vm1, %v2261_v9  ;;  %2188 = vmatpush3.bf16.msra.mxu1 %v2225_v0 }
 0x6d5   : > { %2189 = vmatprep.subr.bf16.mxu1 %v2261_v9 }
 0x6d8   : > { %2190 = vmatpush3.bf16.msra.mxu1 %v2226_v1 }
 0x6d9   : > { %2191 = vmatprep.subr.bf16.mxu1 %v2261_v9 }
 0x6dc   : > { %2192 = vmatpush3.bf16.msra.mxu1 %v2227_v2 }
 0x6dd   : > { %2193 = vmatprep.subr.bf16.mxu1 %v2261_v9 }
 0x6e0   : > { %2194 = vmatpush3.bf16.msra.mxu1 %v2228_v3 }
 0x7a6   : > { %v1752_v42 = vpop.f32.mrb[12].mxu1 }
 0x7a7   : > { %v1753_v43 = vadd.f32 %v2069_v41, %v1752_v42  ;;  %v2177_v44 = vpop.f32.mrb[13].mxu1  ;;  %v2086_v41 = vld [vmem:[%s2635_s12 + $0x1] ss:$0 sm:$0xff] }
 0x7a8   : > { %v1755_v45 = vpop.f32.mrb[14].mxu1 }
 0x7a9   : > { %v2178_v34 = vpop.f32.mrb[15].mxu1  ;;  %v1758_v46 = vadd.f32 %v1753_v43, %v2381_v19  ;;  %v2224_v19 = vld [vmem:[%s2631_s8 + $0x8] sm:$0xff]  }
 0x7aa   : > { %2182 = vmatpush3.bf16.msra.mxu0 %v2224_v19 }
 0x7ab   : > { %v1761_v47 = vsel %vm455_vm0, %v1758_v46, 0.0 }
 0x7ac   : > { %1762 = vadd.xlane.f32.xlu1 %v1761_v47 }
 0x839   : > { %v1763_v48 = vpop.xlane.xlu1 %1762 }
 0x83a   : > { %v1764_v50 = vmul.f32 0.03125, %v1763_v48 }
 0x83c   : > { %v1765_v51 = vsub.f32 %v1758_v46, %v1764_v50 }
 0x83e   : > { %v1766_v36 = vmul.f32 %v1765_v51, %v1765_v51 }
 0x840   : > { %v1767_v52 = vsel %vm455_vm0, %v1766_v36, 0.0 }
 0x841   : > { %1768 = vadd.xlane.f32.xlu0 %v1767_v52 }
 0x8ce   : > { %v1769_v54 = vpop.xlane.xlu0 %1768 }
 0x8cf   : > { %v1770_v55 = vmul.f32 0.03125, %v1769_v54 }
 0x8d1   : > { %v1771_v56 = vadd.f32 1e-12, %v1770_v55 }
 0x8d3   : > { %2247 = vrsqrt.f32 %v1771_v56 }
 0x8dd   : > { %v2248_v57 = vpop.eup %2247 }
 0x8de   : > { %v1773_v59 = vmul.f32 %v2248_v57, %v1765_v51 }
 0x8e0   : > { %v1778_v61 = vmul.f32 %v2073_v58, %v1773_v59 }
 0x8e2   : > { %v1783_v62 = vadd.f32 %v2074_v60, %v1778_v61 }
 0x8e4   : > { %v1784_v63 = vpack.c.bf16 %v1783_v62, %v1783_v62 }
 0x8e6   : > { %2184 = vmatmul.mubr.msk.bf16.vlgmr.msra.gmra.mrb[16].mxu0 %vm455_vm0, %v1784_v63 }
 0x9b9   : > { %v1845_v5 = vpop.f32.mrb[16].mxu0 }
 0x9ba   : > { %v1846_v6 = vadd.f32 %v2075_v4, %v1845_v5  ;;  %v2185_v7 = vpop.f32.mrb[17].mxu0 }
 0x9bb   : > { %v1848_v8 = vpop.f32.mrb[18].mxu0 }
 0x9bc   : > { %v1851_v10 = vmul.f32 %v1846_v6, %v1846_v6  ;;  %v2186_v11 = vpop.f32.mrb[19].mxu0 }
 0x9be   : > { %v1852_v12 = vmul.f32 %v1851_v10, %v1846_v6 }
 0x9c0   : > { %v1853_v13 = vmul.f32 0.044715, %v1852_v12 }
 0x9c2   : > { %v1854_v14 = vadd.f32 %v1853_v13, %v1846_v6 }
 0x9c4   : > { %v1855_v15 = vmul.f32 0.7978846, %v1854_v14 }
 0x9c6   : > { %2249 = vtanh.f32 %v1855_v15 }
 0x9d0   : > { %v2250_v9 = vpop.eup %2249 }
 0x9d1   : > { %v1857_v16 = vadd.f32 1.0, %v2250_v9 }
 0x9d3   : > { %v1858_v17 = vmul.f32 0.5, %v1857_v16 }
 0x9d5   : > { %v1859_v18 = vmul.f32 %v1858_v17, %v1846_v6 }
 0x9d7   : > { %v1860_v20 = vpack.c.bf16 %v1859_v18, %v1859_v18 }
 0x9d9   : > { %2196 = vmatmul.mubr.msk.bf16.vlgmr.msra.gmra.mrb[16].mxu1 %vm1900_vm6, %v1860_v20 }
 0xaac   : > { %v1938_v25 = vpop.f32.mrb[16].mxu1 }
 0xaad   : > { %v1939_v23 = vadd.f32 %v2079_v24, %v1938_v25  ;;  %v2197_v26 = vpop.f32.mrb[17].mxu1 }
 0xaae   : > { %v1941_v30 = vpop.f32.mrb[18].mxu1 }
 0xaaf   : > { %v2198_v31 = vpop.f32.mrb[19].mxu1  ;;  %v1944_v32 = vadd.f32 %v1939_v23, %v1783_v62 }
 0xab1   : > { %v1947_v33 = vsel %vm455_vm0, %v1944_v32, 0.0 }
 0xab2   : > { %1948 = vadd.xlane.f32.xlu0 %v1947_v33 }
 0xb3f   : > { %v1949_v21 = vpop.xlane.xlu0 %1948 }
 0xb40   : > { %v1950_v22 = vmul.f32 0.03125, %v1949_v21 }
 0xb42   : > { %v1951_v35 = vsub.f32 %v1944_v32, %v1950_v22 }
 0xb44   : > { %v1952_v28 = vmul.f32 %v1951_v35, %v1951_v35 }
 0xb46   : > { %v1953_v40 = vsel %vm455_vm0, %v1952_v28, 0.0 }
 0xb47   : > { %1954 = vadd.xlane.f32.xlu1 %v1953_v40 }
 0xbd4   : > { %v1955_v27 = vpop.xlane.xlu1 %1954 }
 0xbd5   : > { %v1956_v29 = vmul.f32 0.03125, %v1955_v27 }
 0xbd7   : > { %v1957_v37 = vadd.f32 1e-12, %v1956_v29 }
 0xbd9   : > { %2251 = vrsqrt.f32 %v1957_v37 }
 0xbe3   : > { %v2252_v38 = vpop.eup %2251 }
 0xbe4   : > { %v1959_v49 = vmul.f32 %v2252_v38, %v1951_v35 }
 0xbe6   : > { %v1964_v42 = vmul.f32 %v2085_v39, %v1959_v49 }
 0xbe8   : > { %v1969_v43 = vadd.f32 %v2086_v41, %v1964_v42 }
 0xbea   : > { %v1970_v44 = vpack.c.bf16 %v1969_v43, %v1969_v43 }
 0xbec   : > { %1972 = vst.msk [vmem:[%s449_s28] sm:$0xf] %vm1971_vm7, %v1970_v44 }
 0xbed PF: > { %s23_s25 = sadd.s32 1, %s2259_s25  }
 0xbee   : > { %p20_p4 = scmp.ge.s32.totalorder %s23_s25, 4  }
 0xbf0   :  { %22 = sbr.rel (!%p20_p4) target bundleno = 1 (0x1), region = 105 }

</bundles_post_ra>
